<compile_context>
chip_gen: v5e
topology: v5e:2x2
jax: 0.10.0
libtpu: 0.0.40
codegen_flags: <defaults>
</compile_context>

<pallas_src>
import functools
import numpy as np

import jax
import jax.numpy as jnp
from jax import lax
from jax.experimental import pallas as pl
from jax.experimental.pallas import tpu as pltpu

CROP = 448  # hard-coded in the PyTorch module


# --------------------------------------------------------------------------
# Resize weight construction (PIL / torchvision antialias=True, bilinear).
# Pure numpy "parameter setup" glue; the actual resize compute runs in Pallas.
# --------------------------------------------------------------------------
def _resize_weights(in_size, out_size):
    scale = in_size / out_size
    filterscale = max(scale, 1.0)          # antialias widens support on downscale
    support = 1.0 * filterscale            # bilinear (triangle) filter support = 1
    W = np.zeros((out_size, in_size), dtype=np.float32)
    for i in range(out_size):
        center = (i + 0.5) * scale
        xmin = max(int(center - support + 0.5), 0)
        xmax = min(int(center + support + 0.5), in_size)
        xs = np.arange(xmin, xmax, dtype=np.float64)
        w = 1.0 - np.abs((xs - center + 0.5) / filterscale)
        w = np.clip(w, 0.0, None)
        s = w.sum()
        if s > 0.0:
            w = w / s
        W[i, xmin:xmax] = w.astype(np.float32)
    return W


def _pick_tile(n, cap, align):
    """Largest divisor of n that is a multiple of `align` and <= cap; else n (full)."""
    for d in range(min(n, cap), 0, -1):
        if n % d == 0 and d % align == 0:
            return d
    return n


# --------------------------------------------------------------------------
# Kernel A: simple separable resize, grid = (C,), no contraction tiling.
# Used for the once-per-image first resize when the whole channel fits VMEM.
#   out[c] = Wh @ img[c] @ Ww^T     (bf16 operands, f32 MXU accumulation)
# --------------------------------------------------------------------------
def _resize_simple_kernel(wh_ref, img_ref, wwt_ref, out_ref):
    t = jnp.dot(wh_ref[...], img_ref[0], preferred_element_type=jnp.float32)
    out_ref[0] = jnp.dot(t.astype(jnp.bfloat16), wwt_ref[...],
                         preferred_element_type=jnp.float32)


# --------------------------------------------------------------------------
# Kernel B: fully tiled separable resize for large inputs.
#   grid = (C, mh, kw, kh); kh tiles Hin (contraction of Wh @ img),
#   kw tiles Win (contraction of (.) @ Ww^T).  Two f32 VMEM accumulators keep
#   ideal matmul flops; no block scales with full Hin or Win (v7x 64 MiB VMEM).
# --------------------------------------------------------------------------
def _resize_tiled_kernel(wh_ref, img_ref, wwt_ref, out_ref, acc1_ref, acc2_ref):
    w = pl.program_id(2)
    h = pl.program_id(3)

    @pl.when(jnp.logical_and(w == 0, h == 0))
    def _():
        acc2_ref[...] = jnp.zeros_like(acc2_ref)

    @pl.when(h == 0)
    def _():
        acc1_ref[...] = jnp.zeros_like(acc1_ref)

    # (tile_hout, tile_hin) @ (tile_hin, tile_win) accumulated over kh
    acc1_ref[...] += jnp.dot(wh_ref[...], img_ref[0],
                             preferred_element_type=jnp.float32)

    @pl.when(h == pl.num_programs(3) - 1)
    def _():
        # (tile_hout, tile_win) @ (tile_win, Wout) accumulated over kw
        acc2_ref[...] += jnp.dot(acc1_ref[...].astype(jnp.bfloat16), wwt_ref[...],
                                 preferred_element_type=jnp.float32)

    @pl.when(jnp.logical_and(w == pl.num_programs(2) - 1,
                             h == pl.num_programs(3) - 1))
    def _():
        out_ref[0] = acc2_ref[...]


def pallas_separable_resize(img_b, wh_b, wwt_b):
    """img_b: (C, Hin, Win) bf16; wh_b: (Hout, Hin) bf16; wwt_b: (Win, Wout) bf16.
    Returns (C, Hout, Wout) f32.  Inputs must already be bf16 (casts are hoisted)."""
    C, Hin, Win = img_b.shape
    Hout = wh_b.shape[0]
    Wout = wwt_b.shape[1]

    # Simple path: whole channel comfortably fits VMEM -> one matmul pair per
    # channel, no accumulators (accumulator-skip when contraction is 1 step).
    if Hin <= 1024 and Win <= 1024 and Hout <= 512:
        # TODO(synk): for deep downscales Wout < 128 forces masked stores and a
        # narrow MXU N; folding channels into the lane dim would fix it, but
        # this kernel runs only once per image.
        return pl.pallas_call(
            _resize_simple_kernel,
            out_shape=jax.ShapeDtypeStruct((C, Hout, Wout), jnp.float32),
            grid_spec=pltpu.PrefetchScalarGridSpec(
                num_scalar_prefetch=0,
                grid=(C,),
                in_specs=[
                    pl.BlockSpec((Hout, Hin), lambda c: (0, 0)),
                    pl.BlockSpec((1, Hin, Win), lambda c: (c, 0, 0)),
                    pl.BlockSpec((Win, Wout), lambda c: (0, 0)),
                ],
                out_specs=pl.BlockSpec((1, Hout, Wout), lambda c: (c, 0, 0)),
            ),
            compiler_params=pltpu.CompilerParams(
                dimension_semantics=("parallel",)),
        )(wh_b, img_b, wwt_b)

    # General path: tile both contraction dims so VMEM stays bounded for
    # camera-sized inputs.  (Wout stays untiled; caps chosen so worst-case
    # blocks stay well under the 32 MiB default scoped VMEM.)
    tile_hout = _pick_tile(Hout, cap=128, align=8)
    tile_hin = _pick_tile(Hin, cap=512, align=128)
    tile_win = _pick_tile(Win, cap=256, align=128)
    mh = Hout // tile_hout
    nkh = Hin // tile_hin
    nkw = Win // tile_win

    return pl.pallas_call(
        _resize_tiled_kernel,
        out_shape=jax.ShapeDtypeStruct((C, Hout, Wout), jnp.float32),
        grid_spec=pltpu.PrefetchScalarGridSpec(
            num_scalar_prefetch=0,
            grid=(C, mh, nkw, nkh),
            in_specs=[
                pl.BlockSpec((tile_hout, tile_hin), lambda c, m, w, h: (m, h)),
                pl.BlockSpec((1, tile_hin, tile_win), lambda c, m, w, h: (c, h, w)),
                pl.BlockSpec((tile_win, Wout), lambda c, m, w, h: (w, 0)),
            ],
            out_specs=pl.BlockSpec((1, tile_hout, Wout),
                                   lambda c, m, w, h: (c, m, 0)),
            scratch_shapes=[
                pltpu.VMEM((tile_hout, tile_win), jnp.float32),
                pltpu.VMEM((tile_hout, Wout), jnp.float32),
            ],
        ),
        compiler_params=pltpu.CompilerParams(
            dimension_semantics=("parallel", "parallel", "arbitrary", "arbitrary")),
    )(wh_b, img_b, wwt_b)


# --------------------------------------------------------------------------
# Kernel C (per attempt, scale_2 != 1): crop-resize + fused mean.
#   in: already-cropped (C, c2, c2) bf16 window (both random crops folded into
#       the slice offsets), hoisted bf16 (448, c2) / (c2, 448) resize weights.
#   out: (C, 448, 448) f32 crop and a (1,1) f32 mean accumulated across the
#        channel grid (channel axis therefore marked "arbitrary").
# --------------------------------------------------------------------------
def _crop_resize_mean_kernel(w2_ref, crop_ref, w2t_ref, out_ref, sum_ref, *,
                             inv_count):
    c = pl.program_id(0)
    t = jnp.dot(w2_ref[...], crop_ref[0], preferred_element_type=jnp.float32)
    o = jnp.dot(t.astype(jnp.bfloat16), w2t_ref[...],
                preferred_element_type=jnp.float32)
    out_ref[0] = o

    @pl.when(c == 0)
    def _():
        sum_ref[...] = jnp.zeros_like(sum_ref)

    sum_ref[...] += jnp.sum(o) * inv_count


def pallas_crop_resize_mean(crop_b, w2_b, w2t_b, inv_count):
    """crop_b: (C, c2, c2) bf16; w2_b: (448, c2) bf16; w2t_b: (c2, 448) bf16.
    Returns ((C, 448, 448) f32 resized crop, scalar f32 mean)."""
    C, c2, _ = crop_b.shape
    out, s = pl.pallas_call(
        functools.partial(_crop_resize_mean_kernel, inv_count=inv_count),
        out_shape=(jax.ShapeDtypeStruct((C, CROP, CROP), jnp.float32),
                   jax.ShapeDtypeStruct((1, 1), jnp.float32)),
        grid_spec=pltpu.PrefetchScalarGridSpec(
            num_scalar_prefetch=0,
            grid=(C,),
            in_specs=[
                pl.BlockSpec((CROP, c2), lambda c: (0, 0)),
                pl.BlockSpec((1, c2, c2), lambda c: (c, 0, 0)),
                pl.BlockSpec((c2, CROP), lambda c: (0, 0)),
            ],
            out_specs=[
                pl.BlockSpec((1, CROP, CROP), lambda c: (c, 0, 0)),
                pl.BlockSpec((1, 1), lambda c: (0, 0)),
            ],
        ),
        compiler_params=pltpu.CompilerParams(
            # The mean output accumulates across channels, so the (single) grid
            # axis must stay sequential; the kernel is DMA/launch-bound anyway.
            dimension_semantics=("arbitrary",)),
    )(w2_b, crop_b, w2t_b)
    return out, s[0, 0]


# --------------------------------------------------------------------------
# Kernel D (per attempt, scale_2 == 1): mean of the f32 crop, single step,
# single assignment (no zero-then-+=).
# --------------------------------------------------------------------------
def _mean_kernel(x_ref, o_ref, *, inv_count):
    o_ref[...] = jnp.zeros_like(o_ref) + jnp.sum(x_ref[...]) * inv_count


def pallas_mean(x, inv_count):
    out = pl.pallas_call(
        functools.partial(_mean_kernel, inv_count=inv_count),
        out_shape=jax.ShapeDtypeStruct((1, 1), jnp.float32),
    )(x)
    return out[0, 0]


# --------------------------------------------------------------------------
# Module wrapper mirroring random_crop_tensor.forward — one jitted function
# per input shape; the retry loop is a device-side lax.while_loop.
# --------------------------------------------------------------------------
class RandomCropTensor:
    def __init__(self, scale, scale_2=1, max_attempts=64):
        self.scale = scale
        self.scale_2 = scale_2
        # TODO(synk): PyTorch loops forever until the mean check passes; we cap
        # attempts on device and return the last crop if none passes.
        self.max_attempts = max_attempts
        self._jit_cache = {}

    def __call__(self, img, key):
        C, H, W = img.shape
        fn = self._jit_cache.get((C, H, W))
        if fn is None:
            fn = self._build(C, H, W)
            self._jit_cache[(C, H, W)] = fn
        return fn(img, key)

    def _build(self, C, H, W):
        scale, scale_2, max_attempts = self.scale, self.scale_2, self.max_attempts

        # --- static setup: shapes, resize weights (bf16, hoisted), pad amounts ---
        new_h = int(H / scale)
        new_w = int(W / scale)
        wh_b = jnp.asarray(_resize_weights(H, new_h), dtype=jnp.bfloat16)    # (new_h, H)
        wwt_b = jnp.asarray(_resize_weights(W, new_w).T, dtype=jnp.bfloat16)  # (W, new_w)

        # Mirror the PyTorch module's `_, img_resize_w, img_resize_h = size()`
        # unpacking (shape[1]/shape[2] swapped).  Harmless: padding = max(...)
        # is symmetric, so padded dims are always >= 448 regardless of the swap.
        img_resize_w = new_h
        img_resize_h = new_w
        img_w_pad = int((CROP - img_resize_w) / 2) + 1 if img_resize_w < CROP else 0
        img_h_pad = int((CROP - img_resize_h) / 2) + 1 if img_resize_h < CROP else 0
        padding = max(img_h_pad, img_w_pad)
        ph = new_h + 2 * padding
        pw = new_w + 2 * padding

        if scale_2 != 1:
            c2 = int(CROP / scale_2)
            w2 = _resize_weights(c2, CROP)                       # (448, c2)
            w2_b = jnp.asarray(w2, dtype=jnp.bfloat16)
            w2t_b = jnp.asarray(w2.T, dtype=jnp.bfloat16)        # (c2, 448)
        else:
            c2 = CROP
            w2_b = w2t_b = None

        inv_count = 1.0 / float(C * CROP * CROP)

        def forward(img, key):
            # transforms.Resize((new_h, new_w), antialias=True) — deterministic,
            # so hoisted out of the retry loop (identical result every attempt).
            img_resize = pallas_separable_resize(img.astype(jnp.bfloat16), wh_b, wwt_b)
            img_padded = jnp.pad(
                img_resize, ((0, 0), (padding, padding), (padding, padding)))
            if scale_2 != 1:
                # bf16 cast hoisted out of the retry loop: every attempt's
                # dynamic_slice and MXU matmuls consume bf16 directly.
                img_src = img_padded.astype(jnp.bfloat16)
            else:
                # crop IS the output -> keep f32 (no rounding of the result).
                img_src = img_padded

            def body(carry):
                key, img_num, _, _ = carry
                key, k1, k2, k3, k4 = jax.random.split(key, 5)
                top = jax.random.randint(k1, (), 0, ph - CROP + 1, dtype=jnp.int32)
                left = jax.random.randint(k2, (), 0, pw - CROP + 1, dtype=jnp.int32)

                if scale_2 != 1:
                    t2 = jax.random.randint(k3, (), 0, CROP - c2 + 1, dtype=jnp.int32)
                    l2 = jax.random.randint(k4, (), 0, CROP - c2 + 1, dtype=jnp.int32)
                    # Both RandomCrops collapse into ONE window read at
                    # (top + t2, left + l2) of size (C, c2, c2); the second
                    # resize + mean run in a single fused Pallas kernel.
                    crop_win = lax.dynamic_slice(
                        img_src, (jnp.int32(0), top + t2, left + l2), (C, c2, c2))
                    crop, m = pallas_crop_resize_mean(crop_win, w2_b, w2t_b, inv_count)
                else:
                    crop = lax.dynamic_slice(
                        img_src, (jnp.int32(0), top, left), (C, CROP, CROP))
                    m = pallas_mean(crop, inv_count)

                if (scale >= 8 and scale_2 <= 4) or (scale_2 > 64):
                    thr = 0.05 / (img_num // 10 + 1)
                else:
                    thr = 0.1 / (img_num // 20 + 1)
                ok = m > thr
                return key, img_num + 1, crop, ok

            def cond(carry):
                _, img_num, _, done = carry
                return jnp.logical_and(jnp.logical_not(done), img_num < max_attempts)

            init = (key,
                    jnp.int32(0),
                    jnp.zeros((C, CROP, CROP), jnp.float32),
                    jnp.array(False))
            _, _, crop, _ = lax.while_loop(cond, body, init)
            return crop

        return jax.jit(forward)


if __name__ == "__main__":
    key = jax.random.PRNGKey(0)
    kimg, kcrop = jax.random.split(key)

    # small deterministic input image (post-ToTensor): 3 x 128 x 128 in [0, 1]
    img = jax.random.uniform(kimg, (3, 128, 128), dtype=jnp.float32)

    # scale=4, scale_2=1 : resize 128->32, pad to 450, random 448-crop, mean check
    out1 = RandomCropTensor(scale=4, scale_2=1)(img, kcrop)
    out1 = jax.block_until_ready(out1)
    assert out1.shape == (3, CROP, CROP) and out1.dtype == jnp.float32
    assert bool(jnp.isfinite(out1).all())

    # scale=4, scale_2=2 : additionally random 224-crop (folded into the slice
    # offsets) then resize to 448 with fused mean
    out2 = RandomCropTensor(scale=4, scale_2=2)(img, kcrop)
    out2 = jax.block_until_ready(out2)
    assert out2.shape == (3, CROP, CROP) and out2.dtype == jnp.float32
    assert bool(jnp.isfinite(out2).all())

    print("KERNEL_OK")
</pallas_src>

<mosaic_0001>
module attributes {stable_mosaic.version = 11 : i64} {
  func.func @_resize_simple_kernel(%arg0: i32, %arg1: memref<32x128xbf16, #tpu.memory_space<vmem>>, %arg2: memref<1x128x128xbf16, #tpu.memory_space<vmem>>, %arg3: memref<128x32xbf16, #tpu.memory_space<vmem>>, %arg4: memref<1x32x32xf32, #tpu.memory_space<vmem>>) attributes {dimension_semantics = [#tpu.dimension_semantics<parallel>], iteration_bounds = array<i64: 3>, scalar_prefetch = 0 : i64, scratch_operands = 0 : i64, tpu.core_type = #tpu.core_type<tc>, window_params = [{pipeline_mode = #tpu.pipeline_mode<synchronous>, transform_indices = @transform_0, window_bounds = array<i64: 32, 128>}, {transform_indices = @transform_1, window_bounds = array<i64: 1, 128, 128>}, {pipeline_mode = #tpu.pipeline_mode<synchronous>, transform_indices = @transform_2, window_bounds = array<i64: 128, 32>}, {transform_indices = @transform_3, window_bounds = array<i64: 1, 32, 32>}]} {
    %c0 = arith.constant 0 : index
    %c0_0 = arith.constant 0 : index
    %0 = vector.load %arg1[%c0, %c0_0] : memref<32x128xbf16, #tpu.memory_space<vmem>>, vector<32x128xbf16>
    %c0_1 = arith.constant 0 : index
    %c0_2 = arith.constant 0 : index
    %c0_3 = arith.constant 0 : index
    %1 = vector.load %arg2[%c0_1, %c0_2, %c0_3] : memref<1x128x128xbf16, #tpu.memory_space<vmem>>, vector<1x128x128xbf16>
    %2 = vector.shape_cast %1 : vector<1x128x128xbf16> to vector<128x128xbf16>
    %cst = arith.constant dense<0.000000e+00> : vector<32x128xf32>
    %3 = tpu.matmul %0, %2, %cst {dimension_numbers = #tpu.dot_dimension_numbers<[1], [0], [0], [1], [0, 0, 1, 1], [], []>} : vector<32x128xbf16>, vector<128x128xbf16>, vector<32x128xf32> -> vector<32x128xf32>
    %4 = arith.truncf %3 : vector<32x128xf32> to vector<32x128xbf16>
    %c0_4 = arith.constant 0 : index
    %c0_5 = arith.constant 0 : index
    %5 = vector.load %arg3[%c0_4, %c0_5] : memref<128x32xbf16, #tpu.memory_space<vmem>>, vector<128x32xbf16>
    %cst_6 = arith.constant dense<0.000000e+00> : vector<32x32xf32>
    %6 = tpu.matmul %4, %5, %cst_6 {dimension_numbers = #tpu.dot_dimension_numbers<[1], [0], [0], [1], [0, 0, 1, 1], [], []>} : vector<32x128xbf16>, vector<128x32xbf16>, vector<32x32xf32> -> vector<32x32xf32>
    %c0_7 = arith.constant 0 : index
    %c0_8 = arith.constant 0 : index
    %c0_9 = arith.constant 0 : index
    %7 = vector.load %arg4[%c0_7, %c0_8, %c0_9] : memref<1x32x32xf32, #tpu.memory_space<vmem>>, vector<1x32x32xf32>
    %8 = vector.shape_cast %7 : vector<1x32x32xf32> to vector<32x32xf32>
    %9 = vector.shape_cast %6 : vector<32x32xf32> to vector<1x32x32xf32>
    tpu.vector_store %arg4[%c0_7, %c0_8, %c0_9], %9 {strides = array<i32>} : memref<1x32x32xf32, #tpu.memory_space<vmem>>, vector<1x32x32xf32>,
    return
  }
  func.func @transform_0(%arg0: i32) -> (i32, i32) {
    %c0_i32 = arith.constant 0 : i32
    %c0_i32_0 = arith.constant 0 : i32
    %c0_i32_1 = arith.constant 0 : i32
    return %c0_i32, %c0_i32_0 : i32, i32
  }
  func.func @transform_1(%arg0: i32) -> (i32, i32, i32) {
    %c0_i32 = arith.constant 0 : i32
    %c0_i32_0 = arith.constant 0 : i32
    %c0_i32_1 = arith.constant 0 : i32
    return %arg0, %c0_i32, %c0_i32_0 : i32, i32, i32
  }
  func.func @transform_2(%arg0: i32) -> (i32, i32) {
    %c0_i32 = arith.constant 0 : i32
    %c0_i32_0 = arith.constant 0 : i32
    %c0_i32_1 = arith.constant 0 : i32
    return %c0_i32, %c0_i32_0 : i32, i32
  }
  func.func @transform_3(%arg0: i32) -> (i32, i32, i32) {
    %c0_i32 = arith.constant 0 : i32
    %c0_i32_0 = arith.constant 0 : i32
    %c0_i32_1 = arith.constant 0 : i32
    return %arg0, %c0_i32, %c0_i32_0 : i32, i32, i32
  }
}

module attributes {stable_mosaic.version = 11 : i64} {
  func.func @_mean_kernel(%arg0: memref<3x448x448xf32, #tpu.memory_space<vmem>>, %arg1: memref<1x1xf32, #tpu.memory_space<vmem>>) attributes {dimension_semantics = [], scalar_prefetch = 0 : i64, scratch_operands = 0 : i64, tpu.core_type = #tpu.core_type<tc>} {
    %cst = arith.constant 0.000000e+00 : f32
    %0 = vector.broadcast %cst : f32 to vector<1x1xf32>
    %c0 = arith.constant 0 : index
    %c0_0 = arith.constant 0 : index
    %c0_1 = arith.constant 0 : index
    %1 = vector.load %arg0[%c0, %c0_0, %c0_1] : memref<3x448x448xf32, #tpu.memory_space<vmem>>, vector<3x448x448xf32>
    %2 = vector.shape_cast %1 : vector<3x448x448xf32> to vector<1x3x448x448xf32>
    %cst_2 = arith.constant dense<0.000000e+00> : vector<1xf32>
    %3 = vector.multi_reduction <add>, %2, %cst_2 [1, 2, 3] : vector<1x3x448x448xf32> to vector<1xf32>
    %4 = vector.shape_cast %3 : vector<1xf32> to vector<1x1x1x1xf32>
    %5 = vector.extract %4[0, 0, 0, 0] : f32 from vector<1x1x1x1xf32>
    %cst_3 = arith.constant 1.66082054E-6 : f32
    %6 = arith.mulf %5, %cst_3 : f32
    %7 = vector.broadcast %6 : f32 to vector<1x1xf32>
    %8 = arith.addf %0, %7 : vector<1x1xf32>
    %c0_4 = arith.constant 0 : index
    %c0_5 = arith.constant 0 : index
    %9 = vector.load %arg1[%c0_4, %c0_5] : memref<1x1xf32, #tpu.memory_space<vmem>>, vector<1x1xf32>
    tpu.vector_store %arg1[%c0_4, %c0_5], %8 {strides = array<i32>} : memref<1x1xf32, #tpu.memory_space<vmem>>, vector<1x1xf32>,
    return
  }
}

</mosaic_0001>

<bundles_post_ra>
// kernel: forward.1
= control target key start
LH: loop header
LB: loop body
LE: loop exit
PB: predicated region body
PF: predicated region fallthrough
CT: control target
= control target key end

     0   :  { %8 = vsyncpa [#allocation3], 0  ;;  %s775_s0 = inlined_call_operand.hbm [shape: bf16[32,128], index: 0, kind: input, shape index: {}]   ;;  %s776_s1 = inlined_call_operand.vmem [shape: bf16[3,128,128], index: 1, kind: input, shape index: {}]   ;;  %s777_s2 = inlined_call_operand.hbm [shape: bf16[128,32], index: 2, kind: input, shape index: {}]   ;;  %s778_s3 = inlined_call_operand.vmem [shape: f32[3,32,32], index: 3, kind: output, shape index: {}]  }
   0x1   :  { %9 = vsyncpa [#allocation5], 0  ;;  %s725_s12 = smov 0  }
   0x2 LB: > { %s125_s15 = sshll.u32 %s775_s0, 4  ;;  %s471_s16 = sadd.s32 4294967295, %s699_s12   ;;  %s699_s12 = sphi %s725_s12, %s15_s12   ;;  %s126_s15 = int_to_ptr.hbm [resolvable:$true] %s125_s15 }
   0x3   : > { %p473_p0 = scmp.ge.s32.totalorder %s699_s12, 1  ;;  %p114_p1 = scmp.lt.s32.totalorder %s699_s12, 4 }
   0x4   : > { %p609_p2 = scmp.eq.s32.totalorder %s471_s16, 0  ;;  %s701_s18 = smov [#allocation2]  }
   0x5   : > { %p736_p3 = pnand %p473_p0, %p114_p1  ;;  %s127_s19 = sshll.u32 %s701_s18, 4  ;;  %s128_s19 = int_to_ptr.vmem [resolvable:$true] %s127_s19 }
   0x6   : > { %s139_s22 = sshll.u32 %s777_s2, 4  ;;  %s702_s23 = smov [#allocation4]   ;;  %s140_s22 = int_to_ptr.hbm [resolvable:$true] %s139_s22 }
   0x7   : > { %p602_p4 = pneg %p736_p3  ;;  %s141_s24 = sshll.u32 %s702_s23, 4  ;;  %s142_s24 = int_to_ptr.vmem [resolvable:$true] %s141_s24 }
   0x8   : > { %s703_s25 = smov 64   ;;  %s704_s26 = smov 4  }
   0x9   : > { %p603_p5 = pnand %p609_p2, %p602_p4  ;;  %165 = sbr.rel (%p736_p3) target bundleno = 337 (0x151), region = 32 }
   0xb   : > { %605 = dma.hbm_to_vmem [thread:$0]  (!%p603_p5), %s126_s15, 256, %s128_s19, [#allocation3], %s703_s25, %s703_s25, %s704_s26  }
   0xc   : > { %608 = dma.hbm_to_vmem [thread:$0]  (!%p603_p5), %s140_s22, 1024, %s142_s24, [#allocation5], %s703_s25, %s703_s25, %s704_s26  }
   0xe   : > { %690 = dma.done.wait (%p609_p2), [#allocation3], 256  }
   0xf   : > { %692 = vsyncadd (%p609_p2), [#allocation3], 4294967040 }
  0x10   : > { %694 = dma.done.wait (%p609_p2), [#allocation5], 1024  }
  0x11   : > { %696 = vsyncadd (%p609_p2), [#allocation5], 4294966272  ;;  %p195_p6 = scmp.lt.s32.totalorder %s471_s16, 2  ;;  %v577_v2 = vld [vmem:[#allocation4 + $0x38] sm:$0xff]  ;;  %v576_v3 = vld [vmem:[#allocation4 + $0x30] sm:$0xff]  ;;  %vm389_vm0 = vcmask 261120  }
  0x12   : > { %370 = vmatpush.bf16.msra.mxu1 %v577_v2  ;;  %586 = vmatpush.bf16.msra.mxu3 %v577_v2  ;;  %v575_v5 = vld [vmem:[#allocation4 + $0x28] sm:$0xff]  ;;  %v574_v7 = vld [vmem:[#allocation4 + $0x20] sm:$0xff]  ;;  %v573_v9 = vld [vmem:[#allocation4 + $0x18] sm:$0xff] }
  0x13   : > { %s781_s16 = smov (!%p195_p6, %s471_s16), 2  ;;  %v560_v13 = vld [vmem:[#allocation2] sm:$0xff]  ;;  %v561_v14 = vld [vmem:[#allocation2 + $0x8] sm:$0xff]  ;;  %v571_v16 = vld [vmem:[#allocation4 + $0x8] sm:$0xff] }
  0x14   : > { %s558_s27 = sshll.u32 %s781_s16, 6  ;;  %v572_v15 = vld [vmem:[#allocation4 + $0x10] sm:$0xff]  ;;  %v570_v17 = vld [vmem:[#allocation4] sm:$0xff]  ;;  %s559_s4 = sshll.u32 %s781_s16, 5 }
  0x15   : > { %s758_s30 = scalar_lea.vmem %s776_s1, %s558_s27  ;;  %s204_s7 = scalar_lea.vmem %s778_s3, %s559_s4 }
  0x16   : > { %v569_v0 = vld [vmem:[%s758_s30 + $0x38] sm:$0xff]  ;;  %v568_v1 = vld [vmem:[%s758_s30 + $0x30] sm:$0xff]  ;;  %v567_v4 = vld [vmem:[%s758_s30 + $0x28] sm:$0xff]  ;;  %371 = vmatpush.bf16.msra.mxu1 %v576_v3  ;;  %587 = vmatpush.bf16.msra.mxu3 %v576_v3 }
  0x17   : > { %285 = vmatpush.bf16.msra.mxu0 %v569_v0  ;;  %578 = vmatpush.bf16.msra.mxu2 %v569_v0  ;;  %v566_v6 = vld [vmem:[%s758_s30 + $0x20] sm:$0xff]  ;;  %v565_v8 = vld [vmem:[%s758_s30 + $0x18] sm:$0xff]  ;;  %v564_v10 = vld [vmem:[%s758_s30 + $0x10] sm:$0xff] }
  0x18   : > { %v563_v11 = vld [vmem:[%s758_s30 + $0x8] sm:$0xff]  ;;  %v562_v12 = vld [vmem:[%s758_s30] sm:$0xff] }
  0x1a   : > { %372 = vmatpush.bf16.msra.mxu1 %v575_v5  ;;  %588 = vmatpush.bf16.msra.mxu3 %v575_v5 }
  0x1b   : > { %286 = vmatpush.bf16.msra.mxu0 %v568_v1  ;;  %579 = vmatpush.bf16.msra.mxu2 %v568_v1 }
  0x1e   : > { %373 = vmatpush.bf16.msra.mxu1 %v574_v7  ;;  %589 = vmatpush.bf16.msra.mxu3 %v574_v7 }
  0x1f   : > { %287 = vmatpush.bf16.msra.mxu0 %v567_v4  ;;  %580 = vmatpush.bf16.msra.mxu2 %v567_v4 }
  0x22   : > { %374 = vmatpush.bf16.msra.mxu1 %v573_v9  ;;  %590 = vmatpush.bf16.msra.mxu3 %v573_v9 }
  0x23   : > { %288 = vmatpush.bf16.msra.mxu0 %v566_v6  ;;  %581 = vmatpush.bf16.msra.mxu2 %v566_v6 }
  0x26   : > { %375 = vmatpush.bf16.msra.mxu1 %v572_v15  ;;  %591 = vmatpush.bf16.msra.mxu3 %v572_v15 }
  0x27   : > { %289 = vmatpush.bf16.msra.mxu0 %v565_v8  ;;  %582 = vmatpush.bf16.msra.mxu2 %v565_v8 }
  0x2a   : > { %376 = vmatpush.bf16.msra.mxu1 %v571_v16  ;;  %592 = vmatpush.bf16.msra.mxu3 %v571_v16 }
  0x2b   : > { %290 = vmatpush.bf16.msra.mxu0 %v564_v10  ;;  %583 = vmatpush.bf16.msra.mxu2 %v564_v10 }
  0x2e   : > { %377 = vmatpush.bf16.msra.mxu1 %v570_v17  ;;  %593 = vmatpush.bf16.msra.mxu3 %v570_v17 }
  0x2f   : > { %291 = vmatpush.bf16.msra.mxu0 %v563_v11  ;;  %584 = vmatpush.bf16.msra.mxu2 %v563_v11 }
  0x33   : > { %292 = vmatpush.bf16.msra.mxu0 %v562_v12  ;;  %585 = vmatpush.bf16.msra.mxu2 %v562_v12 }
  0x36   : > { %293 = vmatmul.bf16.vlgmr.msra.gmra.mxu0 %v560_v13  ;;  %298 = vmatmul.bf16.vlgmr.msra.gmra.mxu2 %v561_v14 }
  0xb3   : > { %v294_v18 = vpop.f32.mrf.mxu0 }
  0xb9   : > { %v299_v19 = vpop.f32.mrf.mxu2 }
  0xbb   : > { %v296_v20 = vpop.f32.mrf.mxu0 }
  0xbc   : > { %v304_v21 = vpack.c.bf16 %v296_v20, %v294_v18 }
  0xbe   : > { %378 = vmatmul.bf16.vlgmr.msra.gmra.mxu1 %v304_v21 }
  0xc1   : > { %v301_v22 = vpop.f32.mrf.mxu2 }
  0xc2   : > { %v305_v23 = vpack.c.bf16 %v301_v22, %v299_v19 }
  0xc4   : > { %383 = vmatmul.bf16.vlgmr.msra.gmra.mxu3 %v305_v23 }
 0x13b   : > { %v379_v24 = vpop.f32.mrf.mxu1 }
 0x13c   : > { %390 = vst.msk [vmem:[%s204_s7] sm:$0xff] %vm389_vm0, %v379_v24 }
 0x143   : > { %v381_v25 = vpop.f32.mrf.mxu1 }
 0x144   : > { %391 = vst.msk [vmem:[%s204_s7 + $0x8] sm:$0xff] %vm389_vm0, %v381_v25 }
 0x147   : > { %v384_v26 = vpop.f32.mrf.mxu3 }
 0x148   : > { %392 = vst.msk [vmem:[%s204_s7 + $0x10] sm:$0xff] %vm389_vm0, %v384_v26 }
 0x14f   : > { %v386_v27 = vpop.f32.mrf.mxu3 }
 0x150   : > { %393 = vst.msk [vmem:[%s204_s7 + $0x18] sm:$0xff] %vm389_vm0, %v386_v27 }
 0x151 PF: > { %s15_s12 = sadd.s32 1, %s699_s12  }
 0x152   : > { %p12_p7 = scmp.ge.s32.totalorder %s15_s12, 5  }
 0x154   :  { %14 = sbr.rel (!%p12_p7) target bundleno = 2 (0x2), region = 71 }
 0x159   :  { %415 = vsyncpa [#allocation3], 1 }
 0x15a   :  { %417 = vsyncpa [#allocation3 + $0x1], 1 }
 0x15b   :  { %418 = vsyncpa [#allocation5], 1 }

// kernel: body.6
= control target key start
LH: loop header
LB: loop body
LE: loop exit
PB: predicated region body
PF: predicated region fallthrough
CT: control target
= control target key end

     0   :  { %6 = vsyncpa [#allocation3], 0  ;;  %vm683_vm0 = vcmask 523264   ;;  %s1580_s16 = smov [#allocation2]   ;;  %vm1533_vm1 = vcmask 0   ;;  %s3778_s0 = inlined_call_operand.vmem [shape: f32[3,448,448], index: 0, kind: input, shape index: {}]   ;;  %s3779_s1 = inlined_call_operand.hbm [shape: f32[1,1], index: 1, kind: output, shape index: {}]  }
   0x1   :  { %v9_v0 = vld [vmem:[%s3778_s0] sm:$0xff]  ;;  %v10_v1 = vld [vmem:[%s3778_s0 + $0x8] sm:$0xff]  ;;  %v11_v2 = vld [vmem:[%s3778_s0 + $0x10] sm:$0xff]  ;;  %s1540_s17 = sshll.u32 %s1580_s16, 4  ;;  %s1541_s17 = int_to_ptr.vmem [resolvable:$true] %s1540_s17 }
   0x2   :  { %v12_v3 = vld [vmem:[%s3778_s0 + $0x18] sm:$0xff]  ;;  %v681_v4 = vadd.f32 %v10_v1, %v9_v0  ;;  %v13_v7 = vld [vmem:[%s3778_s0 + $0x20] sm:$0xff]  ;;  %v14_v9 = vld [vmem:[%s3778_s0 + $0x28] sm:$0xff] }
   0x3   :  { %v684_v5 = vsel %vm683_vm0, %v12_v3, 0.0  ;;  %v16_v10 = vld [vmem:[%s3778_s0 + $0x38] sm:$0xff]  ;;  %v15_v12 = vld [vmem:[%s3778_s0 + $0x30] sm:$0xff]  ;;  %v17_v16 = vld [vmem:[%s3778_s0 + $0x40] sm:$0xff] }
   0x4   :  { %v682_v6 = vadd.f32 %v681_v4, %v11_v2  ;;  %v689_v14 = vsel %vm683_vm0, %v16_v10, 0.0  ;;  %v18_v18 = vld [vmem:[%s3778_s0 + $0x48] sm:$0xff]  ;;  %v20_v19 = vld [vmem:[%s3778_s0 + $0x58] sm:$0xff]  ;;  %v19_v21 = vld [vmem:[%s3778_s0 + $0x50] sm:$0xff] }
   0x5   :  { %v694_v23 = vsel %vm683_vm0, %v20_v19, 0.0  ;;  %v21_v25 = vld [vmem:[%s3778_s0 + $0x60] sm:$0xff]  ;;  %v22_v27 = vld [vmem:[%s3778_s0 + $0x68] sm:$0xff]  ;;  %v24_v28 = vld [vmem:[%s3778_s0 + $0x78] sm:$0xff] }
   0x6   :  { %v685_v8 = vadd.f32 %v684_v5, %v682_v6  ;;  %v23_v30 = vld [vmem:[%s3778_s0 + $0x70] sm:$0xff]  ;;  %v699_v32 = vsel %vm683_vm0, %v24_v28, 0.0  ;;  %v25_v34 = vld [vmem:[%s3778_s0 + $0x80] sm:$0xff]  ;;  %v26_v36 = vld [vmem:[%s3778_s0 + $0x88] sm:$0xff] }
   0x7   :  { %v28_v37 = vld [vmem:[%s3778_s0 + $0x98] sm:$0xff]  ;;  %v27_v39 = vld [vmem:[%s3778_s0 + $0x90] sm:$0xff]  ;;  %v29_v43 = vld [vmem:[%s3778_s0 + $0xa0] sm:$0xff] }
   0x8   :  { %v686_v11 = vadd.f32 %v685_v8, %v13_v7  ;;  %v704_v41 = vsel %vm683_vm0, %v28_v37, 0.0  ;;  %v30_v45 = vld [vmem:[%s3778_s0 + $0xa8] sm:$0xff]  ;;  %v32_v46 = vld [vmem:[%s3778_s0 + $0xb8] sm:$0xff]  ;;  %v31_v48 = vld [vmem:[%s3778_s0 + $0xb0] sm:$0xff] }
   0x9   :  { %v709_v50 = vsel %vm683_vm0, %v32_v46, 0.0  ;;  %v33_v52 = vld [vmem:[%s3778_s0 + $0xc0] sm:$0xff]  ;;  %v34_v54 = vld [vmem:[%s3778_s0 + $0xc8] sm:$0xff]  ;;  %v36_v55 = vld [vmem:[%s3778_s0 + $0xd8] sm:$0xff] }
   0xa   :  { %v687_v13 = vadd.f32 %v686_v11, %v14_v9  ;;  %v35_v57 = vld [vmem:[%s3778_s0 + $0xd0] sm:$0xff]  ;;  %v714_v59 = vsel %vm683_vm0, %v36_v55, 0.0  ;;  %v37_v61 = vld [vmem:[%s3778_s0 + $0xe0] sm:$0xff]  ;;  %v38_v63 = vld [vmem:[%s3778_s0 + $0xe8] sm:$0xff] }
   0xb   :  { %v40_v0 = vld [vmem:[%s3778_s0 + $0xf8] sm:$0xff]  ;;  %v39_v2 = vld [vmem:[%s3778_s0 + $0xf0] sm:$0xff]  ;;  %v41_v6 = vld [vmem:[%s3778_s0 + $0x100] sm:$0xff] }
   0xc   :  { %v688_v15 = vadd.f32 %v687_v13, %v15_v12  ;;  %v719_v4 = vsel %vm683_vm0, %v40_v0, 0.0  ;;  %v42_v8 = vld [vmem:[%s3778_s0 + $0x108] sm:$0xff]  ;;  %v44_v9 = vld [vmem:[%s3778_s0 + $0x118] sm:$0xff]  ;;  %v43_v11 = vld [vmem:[%s3778_s0 + $0x110] sm:$0xff] }
   0xd   :  { %v724_v13 = vsel %vm683_vm0, %v44_v9, 0.0 }
   0xe   :  { %v690_v17 = vadd.f32 %v689_v14, %v688_v15  ;;  %v45_v15 = vld [vmem:[%s3778_s0 + $0x120] sm:$0xff] }
  0x10   :  { %v691_v20 = vadd.f32 %v690_v17, %v17_v16  ;;  %v46_v17 = vld [vmem:[%s3778_s0 + $0x128] sm:$0xff] }
  0x12   :  { %v692_v22 = vadd.f32 %v691_v20, %v18_v18  ;;  %v48_v18 = vld [vmem:[%s3778_s0 + $0x138] sm:$0xff]  ;;  %v47_v20 = vld [vmem:[%s3778_s0 + $0x130] sm:$0xff] }
  0x14   :  { %v693_v24 = vadd.f32 %v692_v22, %v19_v21  ;;  %v729_v22 = vsel %vm683_vm0, %v48_v18, 0.0 }
  0x16   :  { %v695_v26 = vadd.f32 %v694_v23, %v693_v24  ;;  %v49_v24 = vld [vmem:[%s3778_s0 + $0x140] sm:$0xff] }
  0x18   :  { %v696_v29 = vadd.f32 %v695_v26, %v21_v25  ;;  %v50_v26 = vld [vmem:[%s3778_s0 + $0x148] sm:$0xff] }
  0x1a   :  { %v697_v31 = vadd.f32 %v696_v29, %v22_v27  ;;  %v52_v27 = vld [vmem:[%s3778_s0 + $0x158] sm:$0xff]  ;;  %v51_v29 = vld [vmem:[%s3778_s0 + $0x150] sm:$0xff] }
  0x1c   :  { %v698_v33 = vadd.f32 %v697_v31, %v23_v30  ;;  %v734_v31 = vsel %vm683_vm0, %v52_v27, 0.0 }
  0x1e   :  { %v700_v35 = vadd.f32 %v699_v32, %v698_v33  ;;  %v53_v33 = vld [vmem:[%s3778_s0 + $0x160] sm:$0xff] }
  0x20   :  { %v701_v38 = vadd.f32 %v700_v35, %v25_v34  ;;  %v54_v35 = vld [vmem:[%s3778_s0 + $0x168] sm:$0xff] }
  0x22   :  { %v702_v40 = vadd.f32 %v701_v38, %v26_v36  ;;  %v56_v36 = vld [vmem:[%s3778_s0 + $0x178] sm:$0xff]  ;;  %v55_v38 = vld [vmem:[%s3778_s0 + $0x170] sm:$0xff] }
  0x24   :  { %v703_v42 = vadd.f32 %v702_v40, %v27_v39  ;;  %v739_v40 = vsel %vm683_vm0, %v56_v36, 0.0 }
  0x26   :  { %v705_v44 = vadd.f32 %v704_v41, %v703_v42  ;;  %v57_v42 = vld [vmem:[%s3778_s0 + $0x180] sm:$0xff] }
  0x28   :  { %v706_v47 = vadd.f32 %v705_v44, %v29_v43  ;;  %v58_v44 = vld [vmem:[%s3778_s0 + $0x188] sm:$0xff] }
  0x2a   :  { %v707_v49 = vadd.f32 %v706_v47, %v30_v45  ;;  %v60_v45 = vld [vmem:[%s3778_s0 + $0x198] sm:$0xff]  ;;  %v59_v47 = vld [vmem:[%s3778_s0 + $0x190] sm:$0xff] }
  0x2c   :  { %v708_v51 = vadd.f32 %v707_v49, %v31_v48  ;;  %v744_v49 = vsel %vm683_vm0, %v60_v45, 0.0 }
  0x2e   :  { %v710_v53 = vadd.f32 %v709_v50, %v708_v51  ;;  %v61_v51 = vld [vmem:[%s3778_s0 + $0x1a0] sm:$0xff] }
  0x30   :  { %v711_v56 = vadd.f32 %v710_v53, %v33_v52  ;;  %v62_v53 = vld [vmem:[%s3778_s0 + $0x1a8] sm:$0xff] }
  0x32   :  { %v712_v58 = vadd.f32 %v711_v56, %v34_v54  ;;  %v64_v54 = vld [vmem:[%s3778_s0 + $0x1b8] sm:$0xff]  ;;  %v63_v56 = vld [vmem:[%s3778_s0 + $0x1b0] sm:$0xff] }
  0x34   :  { %v713_v60 = vadd.f32 %v712_v58, %v35_v57  ;;  %v749_v58 = vsel %vm683_vm0, %v64_v54, 0.0 }
  0x36   :  { %v715_v62 = vadd.f32 %v714_v59, %v713_v60  ;;  %v65_v60 = vld [vmem:[%s3778_s0 + $0x1c0] sm:$0xff] }
  0x38   :  { %v716_v1 = vadd.f32 %v715_v62, %v37_v61  ;;  %v66_v62 = vld [vmem:[%s3778_s0 + $0x1c8] sm:$0xff] }
  0x3a   :  { %v717_v3 = vadd.f32 %v716_v1, %v38_v63  ;;  %v68_v63 = vld [vmem:[%s3778_s0 + $0x1d8] sm:$0xff]  ;;  %v67_v1 = vld [vmem:[%s3778_s0 + $0x1d0] sm:$0xff] }
  0x3c   :  { %v718_v5 = vadd.f32 %v717_v3, %v39_v2  ;;  %v754_v3 = vsel %vm683_vm0, %v68_v63, 0.0 }
  0x3e   :  { %v720_v7 = vadd.f32 %v719_v4, %v718_v5  ;;  %v69_v5 = vld [vmem:[%s3778_s0 + $0x1e0] sm:$0xff] }
  0x40   :  { %v721_v10 = vadd.f32 %v720_v7, %v41_v6  ;;  %v70_v7 = vld [vmem:[%s3778_s0 + $0x1e8] sm:$0xff] }
  0x42   :  { %v722_v12 = vadd.f32 %v721_v10, %v42_v8  ;;  %v72_v8 = vld [vmem:[%s3778_s0 + $0x1f8] sm:$0xff]  ;;  %v71_v10 = vld [vmem:[%s3778_s0 + $0x1f0] sm:$0xff] }
  0x44   :  { %v723_v14 = vadd.f32 %v722_v12, %v43_v11  ;;  %v759_v12 = vsel %vm683_vm0, %v72_v8, 0.0 }
  0x46   :  { %v725_v16 = vadd.f32 %v724_v13, %v723_v14  ;;  %v73_v14 = vld [vmem:[%s3778_s0 + $0x200] sm:$0xff] }
  0x48   :  { %v726_v19 = vadd.f32 %v725_v16, %v45_v15  ;;  %v74_v16 = vld [vmem:[%s3778_s0 + $0x208] sm:$0xff] }
  0x4a   :  { %v727_v21 = vadd.f32 %v726_v19, %v46_v17  ;;  %v76_v17 = vld [vmem:[%s3778_s0 + $0x218] sm:$0xff]  ;;  %v75_v19 = vld [vmem:[%s3778_s0 + $0x210] sm:$0xff] }
  0x4c   :  { %v728_v23 = vadd.f32 %v727_v21, %v47_v20  ;;  %v764_v21 = vsel %vm683_vm0, %v76_v17, 0.0 }
  0x4e   :  { %v730_v25 = vadd.f32 %v729_v22, %v728_v23  ;;  %v77_v23 = vld [vmem:[%s3778_s0 + $0x220] sm:$0xff] }
  0x50   :  { %v731_v28 = vadd.f32 %v730_v25, %v49_v24  ;;  %v78_v25 = vld [vmem:[%s3778_s0 + $0x228] sm:$0xff] }
  0x52   :  { %v732_v30 = vadd.f32 %v731_v28, %v50_v26  ;;  %v80_v26 = vld [vmem:[%s3778_s0 + $0x238] sm:$0xff]  ;;  %v79_v28 = vld [vmem:[%s3778_s0 + $0x230] sm:$0xff] }
  0x54   :  { %v733_v32 = vadd.f32 %v732_v30, %v51_v29  ;;  %v769_v30 = vsel %vm683_vm0, %v80_v26, 0.0 }
  0x56   :  { %v735_v34 = vadd.f32 %v734_v31, %v733_v32  ;;  %v81_v32 = vld [vmem:[%s3778_s0 + $0x240] sm:$0xff] }
  0x58   :  { %v736_v37 = vadd.f32 %v735_v34, %v53_v33  ;;  %v82_v34 = vld [vmem:[%s3778_s0 + $0x248] sm:$0xff] }
  0x5a   :  { %v737_v39 = vadd.f32 %v736_v37, %v54_v35  ;;  %v84_v35 = vld [vmem:[%s3778_s0 + $0x258] sm:$0xff]  ;;  %v83_v37 = vld [vmem:[%s3778_s0 + $0x250] sm:$0xff] }
  0x5c   :  { %v738_v41 = vadd.f32 %v737_v39, %v55_v38  ;;  %v774_v39 = vsel %vm683_vm0, %v84_v35, 0.0 }
  0x5e   :  { %v740_v43 = vadd.f32 %v739_v40, %v738_v41  ;;  %v85_v41 = vld [vmem:[%s3778_s0 + $0x260] sm:$0xff] }
  0x60   :  { %v741_v46 = vadd.f32 %v740_v43, %v57_v42  ;;  %v86_v43 = vld [vmem:[%s3778_s0 + $0x268] sm:$0xff] }
  0x62   :  { %v742_v48 = vadd.f32 %v741_v46, %v58_v44  ;;  %v88_v44 = vld [vmem:[%s3778_s0 + $0x278] sm:$0xff]  ;;  %v87_v46 = vld [vmem:[%s3778_s0 + $0x270] sm:$0xff] }
  0x64   :  { %v743_v50 = vadd.f32 %v742_v48, %v59_v47  ;;  %v779_v48 = vsel %vm683_vm0, %v88_v44, 0.0 }
  0x66   :  { %v745_v52 = vadd.f32 %v744_v49, %v743_v50  ;;  %v89_v50 = vld [vmem:[%s3778_s0 + $0x280] sm:$0xff] }
  0x68   :  { %v746_v55 = vadd.f32 %v745_v52, %v61_v51  ;;  %v90_v52 = vld [vmem:[%s3778_s0 + $0x288] sm:$0xff] }
  0x6a   :  { %v747_v57 = vadd.f32 %v746_v55, %v62_v53  ;;  %v92_v53 = vld [vmem:[%s3778_s0 + $0x298] sm:$0xff]  ;;  %v91_v55 = vld [vmem:[%s3778_s0 + $0x290] sm:$0xff] }
  0x6c   :  { %v748_v59 = vadd.f32 %v747_v57, %v63_v56  ;;  %v784_v57 = vsel %vm683_vm0, %v92_v53, 0.0 }
  0x6e   :  { %v750_v61 = vadd.f32 %v749_v58, %v748_v59  ;;  %v93_v59 = vld [vmem:[%s3778_s0 + $0x2a0] sm:$0xff] }
  0x70   :  { %v751_v0 = vadd.f32 %v750_v61, %v65_v60  ;;  %v94_v61 = vld [vmem:[%s3778_s0 + $0x2a8] sm:$0xff] }
  0x72   :  { %v752_v2 = vadd.f32 %v751_v0, %v66_v62  ;;  %v96_v62 = vld [vmem:[%s3778_s0 + $0x2b8] sm:$0xff]  ;;  %v95_v0 = vld [vmem:[%s3778_s0 + $0x2b0] sm:$0xff] }
  0x74   :  { %v753_v4 = vadd.f32 %v752_v2, %v67_v1  ;;  %v789_v2 = vsel %vm683_vm0, %v96_v62, 0.0 }
  0x76   :  { %v755_v6 = vadd.f32 %v754_v3, %v753_v4  ;;  %v97_v4 = vld [vmem:[%s3778_s0 + $0x2c0] sm:$0xff] }
  0x78   :  { %v756_v9 = vadd.f32 %v755_v6, %v69_v5  ;;  %v98_v6 = vld [vmem:[%s3778_s0 + $0x2c8] sm:$0xff] }
  0x7a   :  { %v757_v11 = vadd.f32 %v756_v9, %v70_v7  ;;  %v100_v7 = vld [vmem:[%s3778_s0 + $0x2d8] sm:$0xff]  ;;  %v99_v9 = vld [vmem:[%s3778_s0 + $0x2d0] sm:$0xff] }
  0x7c   :  { %v758_v13 = vadd.f32 %v757_v11, %v71_v10  ;;  %v794_v11 = vsel %vm683_vm0, %v100_v7, 0.0 }
  0x7e   :  { %v760_v15 = vadd.f32 %v759_v12, %v758_v13  ;;  %v101_v13 = vld [vmem:[%s3778_s0 + $0x2e0] sm:$0xff] }
  0x80   :  { %v761_v18 = vadd.f32 %v760_v15, %v73_v14  ;;  %v102_v15 = vld [vmem:[%s3778_s0 + $0x2e8] sm:$0xff] }
  0x82   :  { %v762_v20 = vadd.f32 %v761_v18, %v74_v16  ;;  %v104_v16 = vld [vmem:[%s3778_s0 + $0x2f8] sm:$0xff]  ;;  %v103_v18 = vld [vmem:[%s3778_s0 + $0x2f0] sm:$0xff] }
  0x84   :  { %v763_v22 = vadd.f32 %v762_v20, %v75_v19  ;;  %v799_v20 = vsel %vm683_vm0, %v104_v16, 0.0 }
  0x86   :  { %v765_v24 = vadd.f32 %v764_v21, %v763_v22  ;;  %v105_v22 = vld [vmem:[%s3778_s0 + $0x300] sm:$0xff] }
  0x88   :  { %v766_v27 = vadd.f32 %v765_v24, %v77_v23  ;;  %v106_v24 = vld [vmem:[%s3778_s0 + $0x308] sm:$0xff] }
  0x8a   :  { %v767_v29 = vadd.f32 %v766_v27, %v78_v25  ;;  %v108_v25 = vld [vmem:[%s3778_s0 + $0x318] sm:$0xff]  ;;  %v107_v27 = vld [vmem:[%s3778_s0 + $0x310] sm:$0xff] }
  0x8c   :  { %v768_v31 = vadd.f32 %v767_v29, %v79_v28  ;;  %v804_v29 = vsel %vm683_vm0, %v108_v25, 0.0 }
  0x8e   :  { %v770_v33 = vadd.f32 %v769_v30, %v768_v31  ;;  %v109_v31 = vld [vmem:[%s3778_s0 + $0x320] sm:$0xff] }
  0x90   :  { %v771_v36 = vadd.f32 %v770_v33, %v81_v32  ;;  %v110_v33 = vld [vmem:[%s3778_s0 + $0x328] sm:$0xff] }
  0x92   :  { %v772_v38 = vadd.f32 %v771_v36, %v82_v34  ;;  %v112_v34 = vld [vmem:[%s3778_s0 + $0x338] sm:$0xff]  ;;  %v111_v36 = vld [vmem:[%s3778_s0 + $0x330] sm:$0xff] }
  0x94   :  { %v773_v40 = vadd.f32 %v772_v38, %v83_v37  ;;  %v809_v38 = vsel %vm683_vm0, %v112_v34, 0.0 }
  0x96   :  { %v775_v42 = vadd.f32 %v774_v39, %v773_v40  ;;  %v113_v40 = vld [vmem:[%s3778_s0 + $0x340] sm:$0xff] }
  0x98   :  { %v776_v45 = vadd.f32 %v775_v42, %v85_v41  ;;  %v114_v42 = vld [vmem:[%s3778_s0 + $0x348] sm:$0xff] }
  0x9a   :  { %v777_v47 = vadd.f32 %v776_v45, %v86_v43  ;;  %v116_v43 = vld [vmem:[%s3778_s0 + $0x358] sm:$0xff]  ;;  %v115_v45 = vld [vmem:[%s3778_s0 + $0x350] sm:$0xff] }
  0x9c   :  { %v778_v49 = vadd.f32 %v777_v47, %v87_v46  ;;  %v814_v47 = vsel %vm683_vm0, %v116_v43, 0.0 }
  0x9e   :  { %v780_v51 = vadd.f32 %v779_v48, %v778_v49  ;;  %v117_v49 = vld [vmem:[%s3778_s0 + $0x360] sm:$0xff] }
  0xa0   :  { %v781_v54 = vadd.f32 %v780_v51, %v89_v50  ;;  %v118_v51 = vld [vmem:[%s3778_s0 + $0x368] sm:$0xff] }
  0xa2   :  { %v782_v56 = vadd.f32 %v781_v54, %v90_v52  ;;  %v120_v52 = vld [vmem:[%s3778_s0 + $0x378] sm:$0xff]  ;;  %v119_v54 = vld [vmem:[%s3778_s0 + $0x370] sm:$0xff] }
  0xa4   :  { %v783_v58 = vadd.f32 %v782_v56, %v91_v55  ;;  %v819_v56 = vsel %vm683_vm0, %v120_v52, 0.0 }
  0xa6   :  { %v785_v60 = vadd.f32 %v784_v57, %v783_v58  ;;  %v121_v58 = vld [vmem:[%s3778_s0 + $0x380] sm:$0xff] }
  0xa8   :  { %v786_v63 = vadd.f32 %v785_v60, %v93_v59  ;;  %v122_v60 = vld [vmem:[%s3778_s0 + $0x388] sm:$0xff] }
  0xaa   :  { %v787_v1 = vadd.f32 %v786_v63, %v94_v61  ;;  %v124_v61 = vld [vmem:[%s3778_s0 + $0x398] sm:$0xff]  ;;  %v123_v63 = vld [vmem:[%s3778_s0 + $0x390] sm:$0xff] }
  0xac   :  { %v788_v3 = vadd.f32 %v787_v1, %v95_v0  ;;  %v824_v1 = vsel %vm683_vm0, %v124_v61, 0.0 }
  0xae   :  { %v790_v5 = vadd.f32 %v789_v2, %v788_v3  ;;  %v125_v3 = vld [vmem:[%s3778_s0 + $0x3a0] sm:$0xff] }
  0xb0   :  { %v791_v8 = vadd.f32 %v790_v5, %v97_v4  ;;  %v126_v5 = vld [vmem:[%s3778_s0 + $0x3a8] sm:$0xff] }
  0xb2   :  { %v792_v10 = vadd.f32 %v791_v8, %v98_v6  ;;  %v128_v6 = vld [vmem:[%s3778_s0 + $0x3b8] sm:$0xff]  ;;  %v127_v8 = vld [vmem:[%s3778_s0 + $0x3b0] sm:$0xff] }
  0xb4   :  { %v793_v12 = vadd.f32 %v792_v10, %v99_v9  ;;  %v829_v10 = vsel %vm683_vm0, %v128_v6, 0.0 }
  0xb6   :  { %v795_v14 = vadd.f32 %v794_v11, %v793_v12  ;;  %v129_v12 = vld [vmem:[%s3778_s0 + $0x3c0] sm:$0xff] }
  0xb8   :  { %v796_v17 = vadd.f32 %v795_v14, %v101_v13  ;;  %v130_v14 = vld [vmem:[%s3778_s0 + $0x3c8] sm:$0xff] }
  0xba   :  { %v797_v19 = vadd.f32 %v796_v17, %v102_v15  ;;  %v132_v15 = vld [vmem:[%s3778_s0 + $0x3d8] sm:$0xff]  ;;  %v131_v17 = vld [vmem:[%s3778_s0 + $0x3d0] sm:$0xff] }
  0xbc   :  { %v798_v21 = vadd.f32 %v797_v19, %v103_v18  ;;  %v834_v19 = vsel %vm683_vm0, %v132_v15, 0.0 }
  0xbe   :  { %v800_v23 = vadd.f32 %v799_v20, %v798_v21  ;;  %v133_v21 = vld [vmem:[%s3778_s0 + $0x3e0] sm:$0xff] }
  0xc0   :  { %v801_v26 = vadd.f32 %v800_v23, %v105_v22  ;;  %v134_v23 = vld [vmem:[%s3778_s0 + $0x3e8] sm:$0xff] }
  0xc2   :  { %v802_v28 = vadd.f32 %v801_v26, %v106_v24  ;;  %v136_v24 = vld [vmem:[%s3778_s0 + $0x3f8] sm:$0xff]  ;;  %v135_v26 = vld [vmem:[%s3778_s0 + $0x3f0] sm:$0xff] }
  0xc4   :  { %v803_v30 = vadd.f32 %v802_v28, %v107_v27  ;;  %v839_v28 = vsel %vm683_vm0, %v136_v24, 0.0 }
  0xc6   :  { %v805_v32 = vadd.f32 %v804_v29, %v803_v30  ;;  %v137_v30 = vld [vmem:[%s3778_s0 + $0x400] sm:$0xff] }
  0xc8   :  { %v806_v35 = vadd.f32 %v805_v32, %v109_v31  ;;  %v138_v32 = vld [vmem:[%s3778_s0 + $0x408] sm:$0xff] }
  0xca   :  { %v807_v37 = vadd.f32 %v806_v35, %v110_v33  ;;  %v140_v33 = vld [vmem:[%s3778_s0 + $0x418] sm:$0xff]  ;;  %v139_v35 = vld [vmem:[%s3778_s0 + $0x410] sm:$0xff] }
  0xcc   :  { %v808_v39 = vadd.f32 %v807_v37, %v111_v36  ;;  %v844_v37 = vsel %vm683_vm0, %v140_v33, 0.0 }
  0xce   :  { %v810_v41 = vadd.f32 %v809_v38, %v808_v39  ;;  %v141_v39 = vld [vmem:[%s3778_s0 + $0x420] sm:$0xff] }
  0xd0   :  { %v811_v44 = vadd.f32 %v810_v41, %v113_v40  ;;  %v142_v41 = vld [vmem:[%s3778_s0 + $0x428] sm:$0xff] }
  0xd2   :  { %v812_v46 = vadd.f32 %v811_v44, %v114_v42  ;;  %v144_v42 = vld [vmem:[%s3778_s0 + $0x438] sm:$0xff]  ;;  %v143_v44 = vld [vmem:[%s3778_s0 + $0x430] sm:$0xff] }
  0xd4   :  { %v813_v48 = vadd.f32 %v812_v46, %v115_v45  ;;  %v849_v46 = vsel %vm683_vm0, %v144_v42, 0.0 }
  0xd6   :  { %v815_v50 = vadd.f32 %v814_v47, %v813_v48  ;;  %v145_v48 = vld [vmem:[%s3778_s0 + $0x440] sm:$0xff] }
  0xd8   :  { %v816_v53 = vadd.f32 %v815_v50, %v117_v49  ;;  %v146_v50 = vld [vmem:[%s3778_s0 + $0x448] sm:$0xff] }
  0xda   :  { %v817_v55 = vadd.f32 %v816_v53, %v118_v51  ;;  %v148_v51 = vld [vmem:[%s3778_s0 + $0x458] sm:$0xff]  ;;  %v147_v53 = vld [vmem:[%s3778_s0 + $0x450] sm:$0xff] }
  0xdc   :  { %v818_v57 = vadd.f32 %v817_v55, %v119_v54  ;;  %v854_v55 = vsel %vm683_vm0, %v148_v51, 0.0 }
  0xde   :  { %v820_v59 = vadd.f32 %v819_v56, %v818_v57  ;;  %v149_v57 = vld [vmem:[%s3778_s0 + $0x460] sm:$0xff] }
  0xe0   :  { %v821_v62 = vadd.f32 %v820_v59, %v121_v58  ;;  %v150_v59 = vld [vmem:[%s3778_s0 + $0x468] sm:$0xff] }
  0xe2   :  { %v822_v0 = vadd.f32 %v821_v62, %v122_v60  ;;  %v152_v60 = vld [vmem:[%s3778_s0 + $0x478] sm:$0xff]  ;;  %v151_v62 = vld [vmem:[%s3778_s0 + $0x470] sm:$0xff] }
  0xe4   :  { %v823_v2 = vadd.f32 %v822_v0, %v123_v63  ;;  %v859_v0 = vsel %vm683_vm0, %v152_v60, 0.0 }
  0xe6   :  { %v825_v4 = vadd.f32 %v824_v1, %v823_v2  ;;  %v153_v2 = vld [vmem:[%s3778_s0 + $0x480] sm:$0xff] }
  0xe8   :  { %v826_v7 = vadd.f32 %v825_v4, %v125_v3  ;;  %v154_v4 = vld [vmem:[%s3778_s0 + $0x488] sm:$0xff] }
  0xea   :  { %v827_v9 = vadd.f32 %v826_v7, %v126_v5  ;;  %v156_v5 = vld [vmem:[%s3778_s0 + $0x498] sm:$0xff]  ;;  %v155_v7 = vld [vmem:[%s3778_s0 + $0x490] sm:$0xff] }
  0xec   :  { %v828_v11 = vadd.f32 %v827_v9, %v127_v8  ;;  %v864_v9 = vsel %vm683_vm0, %v156_v5, 0.0 }
  0xee   :  { %v830_v13 = vadd.f32 %v829_v10, %v828_v11  ;;  %v157_v11 = vld [vmem:[%s3778_s0 + $0x4a0] sm:$0xff] }
  0xf0   :  { %v831_v16 = vadd.f32 %v830_v13, %v129_v12  ;;  %v158_v13 = vld [vmem:[%s3778_s0 + $0x4a8] sm:$0xff] }
  0xf2   :  { %v832_v18 = vadd.f32 %v831_v16, %v130_v14  ;;  %v160_v14 = vld [vmem:[%s3778_s0 + $0x4b8] sm:$0xff]  ;;  %v159_v16 = vld [vmem:[%s3778_s0 + $0x4b0] sm:$0xff] }
  0xf4   :  { %v833_v20 = vadd.f32 %v832_v18, %v131_v17  ;;  %v869_v18 = vsel %vm683_vm0, %v160_v14, 0.0 }
  0xf6   :  { %v835_v22 = vadd.f32 %v834_v19, %v833_v20  ;;  %v161_v20 = vld [vmem:[%s3778_s0 + $0x4c0] sm:$0xff] }
  0xf8   :  { %v836_v25 = vadd.f32 %v835_v22, %v133_v21  ;;  %v162_v22 = vld [vmem:[%s3778_s0 + $0x4c8] sm:$0xff] }
  0xfa   :  { %v837_v27 = vadd.f32 %v836_v25, %v134_v23  ;;  %v164_v23 = vld [vmem:[%s3778_s0 + $0x4d8] sm:$0xff]  ;;  %v163_v25 = vld [vmem:[%s3778_s0 + $0x4d0] sm:$0xff] }
  0xfc   :  { %v838_v29 = vadd.f32 %v837_v27, %v135_v26  ;;  %v874_v27 = vsel %vm683_vm0, %v164_v23, 0.0 }
  0xfe   :  { %v840_v31 = vadd.f32 %v839_v28, %v838_v29  ;;  %v165_v29 = vld [vmem:[%s3778_s0 + $0x4e0] sm:$0xff] }
 0x100   :  { %v841_v34 = vadd.f32 %v840_v31, %v137_v30  ;;  %v166_v31 = vld [vmem:[%s3778_s0 + $0x4e8] sm:$0xff] }
 0x102   :  { %v842_v36 = vadd.f32 %v841_v34, %v138_v32  ;;  %v168_v32 = vld [vmem:[%s3778_s0 + $0x4f8] sm:$0xff]  ;;  %v167_v34 = vld [vmem:[%s3778_s0 + $0x4f0] sm:$0xff] }
 0x104   :  { %v843_v38 = vadd.f32 %v842_v36, %v139_v35  ;;  %v879_v36 = vsel %vm683_vm0, %v168_v32, 0.0 }
 0x106   :  { %v845_v40 = vadd.f32 %v844_v37, %v843_v38  ;;  %v169_v38 = vld [vmem:[%s3778_s0 + $0x500] sm:$0xff] }
 0x108   :  { %v846_v43 = vadd.f32 %v845_v40, %v141_v39  ;;  %v170_v40 = vld [vmem:[%s3778_s0 + $0x508] sm:$0xff] }
 0x10a   :  { %v847_v45 = vadd.f32 %v846_v43, %v142_v41  ;;  %v172_v41 = vld [vmem:[%s3778_s0 + $0x518] sm:$0xff]  ;;  %v171_v43 = vld [vmem:[%s3778_s0 + $0x510] sm:$0xff] }
 0x10c   :  { %v848_v47 = vadd.f32 %v847_v45, %v143_v44  ;;  %v884_v45 = vsel %vm683_vm0, %v172_v41, 0.0 }
 0x10e   :  { %v850_v49 = vadd.f32 %v849_v46, %v848_v47  ;;  %v173_v47 = vld [vmem:[%s3778_s0 + $0x520] sm:$0xff] }
 0x110   :  { %v851_v52 = vadd.f32 %v850_v49, %v145_v48  ;;  %v174_v49 = vld [vmem:[%s3778_s0 + $0x528] sm:$0xff] }
 0x112   :  { %v852_v54 = vadd.f32 %v851_v52, %v146_v50  ;;  %v176_v50 = vld [vmem:[%s3778_s0 + $0x538] sm:$0xff]  ;;  %v175_v52 = vld [vmem:[%s3778_s0 + $0x530] sm:$0xff] }
 0x114   :  { %v853_v56 = vadd.f32 %v852_v54, %v147_v53  ;;  %v889_v54 = vsel %vm683_vm0, %v176_v50, 0.0 }
 0x116   :  { %v855_v58 = vadd.f32 %v854_v55, %v853_v56  ;;  %v177_v56 = vld [vmem:[%s3778_s0 + $0x540] sm:$0xff] }
 0x118   :  { %v856_v61 = vadd.f32 %v855_v58, %v149_v57  ;;  %v178_v58 = vld [vmem:[%s3778_s0 + $0x548] sm:$0xff] }
 0x11a   :  { %v857_v63 = vadd.f32 %v856_v61, %v150_v59  ;;  %v180_v59 = vld [vmem:[%s3778_s0 + $0x558] sm:$0xff]  ;;  %v179_v61 = vld [vmem:[%s3778_s0 + $0x550] sm:$0xff] }
 0x11c   :  { %v858_v1 = vadd.f32 %v857_v63, %v151_v62  ;;  %v894_v63 = vsel %vm683_vm0, %v180_v59, 0.0 }
 0x11e   :  { %v860_v3 = vadd.f32 %v859_v0, %v858_v1  ;;  %v181_v1 = vld [vmem:[%s3778_s0 + $0x560] sm:$0xff] }
 0x120   :  { %v861_v6 = vadd.f32 %v860_v3, %v153_v2  ;;  %v182_v3 = vld [vmem:[%s3778_s0 + $0x568] sm:$0xff] }
 0x122   :  { %v862_v8 = vadd.f32 %v861_v6, %v154_v4  ;;  %v184_v4 = vld [vmem:[%s3778_s0 + $0x578] sm:$0xff]  ;;  %v183_v6 = vld [vmem:[%s3778_s0 + $0x570] sm:$0xff] }
 0x124   :  { %v863_v10 = vadd.f32 %v862_v8, %v155_v7  ;;  %v899_v8 = vsel %vm683_vm0, %v184_v4, 0.0 }
 0x126   :  { %v865_v12 = vadd.f32 %v864_v9, %v863_v10  ;;  %v185_v10 = vld [vmem:[%s3778_s0 + $0x580] sm:$0xff] }
 0x128   :  { %v866_v15 = vadd.f32 %v865_v12, %v157_v11  ;;  %v186_v12 = vld [vmem:[%s3778_s0 + $0x588] sm:$0xff] }
 0x12a   :  { %v867_v17 = vadd.f32 %v866_v15, %v158_v13  ;;  %v188_v13 = vld [vmem:[%s3778_s0 + $0x598] sm:$0xff]  ;;  %v187_v15 = vld [vmem:[%s3778_s0 + $0x590] sm:$0xff] }
 0x12c   :  { %v868_v19 = vadd.f32 %v867_v17, %v159_v16  ;;  %v904_v17 = vsel %vm683_vm0, %v188_v13, 0.0 }
 0x12e   :  { %v870_v21 = vadd.f32 %v869_v18, %v868_v19  ;;  %v189_v19 = vld [vmem:[%s3778_s0 + $0x5a0] sm:$0xff] }
 0x130   :  { %v871_v24 = vadd.f32 %v870_v21, %v161_v20  ;;  %v190_v21 = vld [vmem:[%s3778_s0 + $0x5a8] sm:$0xff] }
 0x132   :  { %v872_v26 = vadd.f32 %v871_v24, %v162_v22  ;;  %v192_v22 = vld [vmem:[%s3778_s0 + $0x5b8] sm:$0xff]  ;;  %v191_v24 = vld [vmem:[%s3778_s0 + $0x5b0] sm:$0xff] }
 0x134   :  { %v873_v28 = vadd.f32 %v872_v26, %v163_v25  ;;  %v909_v26 = vsel %vm683_vm0, %v192_v22, 0.0 }
 0x136   :  { %v875_v30 = vadd.f32 %v874_v27, %v873_v28  ;;  %v193_v28 = vld [vmem:[%s3778_s0 + $0x5c0] sm:$0xff] }
 0x138   :  { %v876_v33 = vadd.f32 %v875_v30, %v165_v29  ;;  %v194_v30 = vld [vmem:[%s3778_s0 + $0x5c8] sm:$0xff] }
 0x13a   :  { %v877_v35 = vadd.f32 %v876_v33, %v166_v31  ;;  %v196_v31 = vld [vmem:[%s3778_s0 + $0x5d8] sm:$0xff]  ;;  %v195_v33 = vld [vmem:[%s3778_s0 + $0x5d0] sm:$0xff] }
 0x13c   :  { %v878_v37 = vadd.f32 %v877_v35, %v167_v34  ;;  %v914_v35 = vsel %vm683_vm0, %v196_v31, 0.0 }
 0x13e   :  { %v880_v39 = vadd.f32 %v879_v36, %v878_v37  ;;  %v197_v37 = vld [vmem:[%s3778_s0 + $0x5e0] sm:$0xff] }
 0x140   :  { %v881_v42 = vadd.f32 %v880_v39, %v169_v38  ;;  %v198_v39 = vld [vmem:[%s3778_s0 + $0x5e8] sm:$0xff] }
 0x142   :  { %v882_v44 = vadd.f32 %v881_v42, %v170_v40  ;;  %v200_v40 = vld [vmem:[%s3778_s0 + $0x5f8] sm:$0xff]  ;;  %v199_v42 = vld [vmem:[%s3778_s0 + $0x5f0] sm:$0xff] }
 0x144   :  { %v883_v46 = vadd.f32 %v882_v44, %v171_v43  ;;  %v919_v44 = vsel %vm683_vm0, %v200_v40, 0.0 }
 0x146   :  { %v885_v48 = vadd.f32 %v884_v45, %v883_v46  ;;  %v201_v46 = vld [vmem:[%s3778_s0 + $0x600] sm:$0xff] }
 0x148   :  { %v886_v51 = vadd.f32 %v885_v48, %v173_v47  ;;  %v202_v48 = vld [vmem:[%s3778_s0 + $0x608] sm:$0xff] }
 0x14a   :  { %v887_v53 = vadd.f32 %v886_v51, %v174_v49  ;;  %v204_v49 = vld [vmem:[%s3778_s0 + $0x618] sm:$0xff]  ;;  %v203_v51 = vld [vmem:[%s3778_s0 + $0x610] sm:$0xff] }
 0x14c   :  { %v888_v55 = vadd.f32 %v887_v53, %v175_v52  ;;  %v924_v53 = vsel %vm683_vm0, %v204_v49, 0.0 }
 0x14e   :  { %v890_v57 = vadd.f32 %v889_v54, %v888_v55  ;;  %v205_v55 = vld [vmem:[%s3778_s0 + $0x620] sm:$0xff] }
 0x150   :  { %v891_v60 = vadd.f32 %v890_v57, %v177_v56  ;;  %v206_v57 = vld [vmem:[%s3778_s0 + $0x628] sm:$0xff] }
 0x152   :  { %v892_v62 = vadd.f32 %v891_v60, %v178_v58  ;;  %v208_v58 = vld [vmem:[%s3778_s0 + $0x638] sm:$0xff]  ;;  %v207_v60 = vld [vmem:[%s3778_s0 + $0x630] sm:$0xff] }
 0x154   :  { %v893_v0 = vadd.f32 %v892_v62, %v179_v61  ;;  %v929_v62 = vsel %vm683_vm0, %v208_v58, 0.0 }
 0x156   :  { %v895_v2 = vadd.f32 %v894_v63, %v893_v0  ;;  %v209_v0 = vld [vmem:[%s3778_s0 + $0x640] sm:$0xff] }
 0x158   :  { %v896_v5 = vadd.f32 %v895_v2, %v181_v1  ;;  %v210_v2 = vld [vmem:[%s3778_s0 + $0x648] sm:$0xff] }
 0x15a   :  { %v897_v7 = vadd.f32 %v896_v5, %v182_v3  ;;  %v212_v3 = vld [vmem:[%s3778_s0 + $0x658] sm:$0xff]  ;;  %v211_v5 = vld [vmem:[%s3778_s0 + $0x650] sm:$0xff] }
 0x15c   :  { %v898_v9 = vadd.f32 %v897_v7, %v183_v6  ;;  %v934_v7 = vsel %vm683_vm0, %v212_v3, 0.0 }
 0x15e   :  { %v900_v11 = vadd.f32 %v899_v8, %v898_v9  ;;  %v213_v9 = vld [vmem:[%s3778_s0 + $0x660] sm:$0xff] }
 0x160   :  { %v901_v14 = vadd.f32 %v900_v11, %v185_v10  ;;  %v214_v11 = vld [vmem:[%s3778_s0 + $0x668] sm:$0xff] }
 0x162   :  { %v902_v16 = vadd.f32 %v901_v14, %v186_v12  ;;  %v216_v12 = vld [vmem:[%s3778_s0 + $0x678] sm:$0xff]  ;;  %v215_v14 = vld [vmem:[%s3778_s0 + $0x670] sm:$0xff] }
 0x164   :  { %v903_v18 = vadd.f32 %v902_v16, %v187_v15  ;;  %v939_v16 = vsel %vm683_vm0, %v216_v12, 0.0 }
 0x166   :  { %v905_v20 = vadd.f32 %v904_v17, %v903_v18  ;;  %v217_v18 = vld [vmem:[%s3778_s0 + $0x680] sm:$0xff] }
 0x168   :  { %v906_v23 = vadd.f32 %v905_v20, %v189_v19  ;;  %v218_v20 = vld [vmem:[%s3778_s0 + $0x688] sm:$0xff] }
 0x16a   :  { %v907_v25 = vadd.f32 %v906_v23, %v190_v21  ;;  %v220_v21 = vld [vmem:[%s3778_s0 + $0x698] sm:$0xff]  ;;  %v219_v23 = vld [vmem:[%s3778_s0 + $0x690] sm:$0xff] }
 0x16c   :  { %v908_v27 = vadd.f32 %v907_v25, %v191_v24  ;;  %v944_v25 = vsel %vm683_vm0, %v220_v21, 0.0 }
 0x16e   :  { %v910_v29 = vadd.f32 %v909_v26, %v908_v27  ;;  %v221_v27 = vld [vmem:[%s3778_s0 + $0x6a0] sm:$0xff] }
 0x170   :  { %v911_v32 = vadd.f32 %v910_v29, %v193_v28  ;;  %v222_v29 = vld [vmem:[%s3778_s0 + $0x6a8] sm:$0xff] }
 0x172   :  { %v912_v34 = vadd.f32 %v911_v32, %v194_v30  ;;  %v224_v30 = vld [vmem:[%s3778_s0 + $0x6b8] sm:$0xff]  ;;  %v223_v32 = vld [vmem:[%s3778_s0 + $0x6b0] sm:$0xff] }
 0x174   :  { %v913_v36 = vadd.f32 %v912_v34, %v195_v33  ;;  %v949_v34 = vsel %vm683_vm0, %v224_v30, 0.0 }
 0x176   :  { %v915_v38 = vadd.f32 %v914_v35, %v913_v36  ;;  %v225_v36 = vld [vmem:[%s3778_s0 + $0x6c0] sm:$0xff] }
 0x178   :  { %v916_v41 = vadd.f32 %v915_v38, %v197_v37  ;;  %v226_v38 = vld [vmem:[%s3778_s0 + $0x6c8] sm:$0xff] }
 0x17a   :  { %v917_v43 = vadd.f32 %v916_v41, %v198_v39  ;;  %v228_v39 = vld [vmem:[%s3778_s0 + $0x6d8] sm:$0xff]  ;;  %v227_v41 = vld [vmem:[%s3778_s0 + $0x6d0] sm:$0xff] }
 0x17c   :  { %v918_v45 = vadd.f32 %v917_v43, %v199_v42  ;;  %v954_v43 = vsel %vm683_vm0, %v228_v39, 0.0 }
 0x17e   :  { %v920_v47 = vadd.f32 %v919_v44, %v918_v45  ;;  %v229_v45 = vld [vmem:[%s3778_s0 + $0x6e0] sm:$0xff] }
 0x180   :  { %v921_v50 = vadd.f32 %v920_v47, %v201_v46  ;;  %v230_v47 = vld [vmem:[%s3778_s0 + $0x6e8] sm:$0xff] }
 0x182   :  { %v922_v52 = vadd.f32 %v921_v50, %v202_v48  ;;  %v232_v48 = vld [vmem:[%s3778_s0 + $0x6f8] sm:$0xff]  ;;  %v231_v50 = vld [vmem:[%s3778_s0 + $0x6f0] sm:$0xff] }
 0x184   :  { %v923_v54 = vadd.f32 %v922_v52, %v203_v51  ;;  %v959_v52 = vsel %vm683_vm0, %v232_v48, 0.0 }
 0x186   :  { %v925_v56 = vadd.f32 %v924_v53, %v923_v54  ;;  %v233_v54 = vld [vmem:[%s3778_s0 + $0x700] sm:$0xff] }
 0x188   :  { %v926_v59 = vadd.f32 %v925_v56, %v205_v55  ;;  %v234_v56 = vld [vmem:[%s3778_s0 + $0x708] sm:$0xff] }
 0x18a   :  { %v927_v61 = vadd.f32 %v926_v59, %v206_v57  ;;  %v236_v57 = vld [vmem:[%s3778_s0 + $0x718] sm:$0xff]  ;;  %v235_v59 = vld [vmem:[%s3778_s0 + $0x710] sm:$0xff] }
 0x18c   :  { %v928_v63 = vadd.f32 %v927_v61, %v207_v60  ;;  %v964_v61 = vsel %vm683_vm0, %v236_v57, 0.0 }
 0x18e   :  { %v930_v1 = vadd.f32 %v929_v62, %v928_v63  ;;  %v237_v63 = vld [vmem:[%s3778_s0 + $0x720] sm:$0xff] }
 0x190   :  { %v931_v4 = vadd.f32 %v930_v1, %v209_v0  ;;  %v238_v1 = vld [vmem:[%s3778_s0 + $0x728] sm:$0xff] }
 0x192   :  { %v932_v6 = vadd.f32 %v931_v4, %v210_v2  ;;  %v240_v2 = vld [vmem:[%s3778_s0 + $0x738] sm:$0xff]  ;;  %v239_v4 = vld [vmem:[%s3778_s0 + $0x730] sm:$0xff] }
 0x194   :  { %v933_v8 = vadd.f32 %v932_v6, %v211_v5  ;;  %v969_v6 = vsel %vm683_vm0, %v240_v2, 0.0 }
 0x196   :  { %v935_v10 = vadd.f32 %v934_v7, %v933_v8  ;;  %v241_v8 = vld [vmem:[%s3778_s0 + $0x740] sm:$0xff] }
 0x198   :  { %v936_v13 = vadd.f32 %v935_v10, %v213_v9  ;;  %v242_v10 = vld [vmem:[%s3778_s0 + $0x748] sm:$0xff] }
 0x19a   :  { %v937_v15 = vadd.f32 %v936_v13, %v214_v11  ;;  %v244_v11 = vld [vmem:[%s3778_s0 + $0x758] sm:$0xff]  ;;  %v243_v13 = vld [vmem:[%s3778_s0 + $0x750] sm:$0xff] }
 0x19c   :  { %v938_v17 = vadd.f32 %v937_v15, %v215_v14  ;;  %v974_v15 = vsel %vm683_vm0, %v244_v11, 0.0 }
 0x19e   :  { %v940_v19 = vadd.f32 %v939_v16, %v938_v17  ;;  %v245_v17 = vld [vmem:[%s3778_s0 + $0x760] sm:$0xff] }
 0x1a0   :  { %v941_v22 = vadd.f32 %v940_v19, %v217_v18  ;;  %v246_v19 = vld [vmem:[%s3778_s0 + $0x768] sm:$0xff] }
 0x1a2   :  { %v942_v24 = vadd.f32 %v941_v22, %v218_v20  ;;  %v248_v20 = vld [vmem:[%s3778_s0 + $0x778] sm:$0xff]  ;;  %v247_v22 = vld [vmem:[%s3778_s0 + $0x770] sm:$0xff] }
 0x1a4   :  { %v943_v26 = vadd.f32 %v942_v24, %v219_v23  ;;  %v979_v24 = vsel %vm683_vm0, %v248_v20, 0.0 }
 0x1a6   :  { %v945_v28 = vadd.f32 %v944_v25, %v943_v26  ;;  %v249_v26 = vld [vmem:[%s3778_s0 + $0x780] sm:$0xff] }
 0x1a8   :  { %v946_v31 = vadd.f32 %v945_v28, %v221_v27  ;;  %v250_v28 = vld [vmem:[%s3778_s0 + $0x788] sm:$0xff] }
 0x1aa   :  { %v947_v33 = vadd.f32 %v946_v31, %v222_v29  ;;  %v252_v29 = vld [vmem:[%s3778_s0 + $0x798] sm:$0xff]  ;;  %v251_v31 = vld [vmem:[%s3778_s0 + $0x790] sm:$0xff] }
 0x1ac   :  { %v948_v35 = vadd.f32 %v947_v33, %v223_v32  ;;  %v984_v33 = vsel %vm683_vm0, %v252_v29, 0.0 }
 0x1ae   :  { %v950_v37 = vadd.f32 %v949_v34, %v948_v35  ;;  %v253_v35 = vld [vmem:[%s3778_s0 + $0x7a0] sm:$0xff] }
 0x1b0   :  { %v951_v40 = vadd.f32 %v950_v37, %v225_v36  ;;  %v254_v37 = vld [vmem:[%s3778_s0 + $0x7a8] sm:$0xff] }
 0x1b2   :  { %v952_v42 = vadd.f32 %v951_v40, %v226_v38  ;;  %v256_v38 = vld [vmem:[%s3778_s0 + $0x7b8] sm:$0xff]  ;;  %v255_v40 = vld [vmem:[%s3778_s0 + $0x7b0] sm:$0xff] }
 0x1b4   :  { %v953_v44 = vadd.f32 %v952_v42, %v227_v41  ;;  %v989_v42 = vsel %vm683_vm0, %v256_v38, 0.0 }
 0x1b6   :  { %v955_v46 = vadd.f32 %v954_v43, %v953_v44  ;;  %v257_v44 = vld [vmem:[%s3778_s0 + $0x7c0] sm:$0xff] }
 0x1b8   :  { %v956_v49 = vadd.f32 %v955_v46, %v229_v45  ;;  %v258_v46 = vld [vmem:[%s3778_s0 + $0x7c8] sm:$0xff] }
 0x1ba   :  { %v957_v51 = vadd.f32 %v956_v49, %v230_v47  ;;  %v260_v47 = vld [vmem:[%s3778_s0 + $0x7d8] sm:$0xff]  ;;  %v259_v49 = vld [vmem:[%s3778_s0 + $0x7d0] sm:$0xff] }
 0x1bc   :  { %v958_v53 = vadd.f32 %v957_v51, %v231_v50  ;;  %v994_v51 = vsel %vm683_vm0, %v260_v47, 0.0 }
 0x1be   :  { %v960_v55 = vadd.f32 %v959_v52, %v958_v53  ;;  %v261_v53 = vld [vmem:[%s3778_s0 + $0x7e0] sm:$0xff] }
 0x1c0   :  { %v961_v58 = vadd.f32 %v960_v55, %v233_v54  ;;  %v262_v55 = vld [vmem:[%s3778_s0 + $0x7e8] sm:$0xff] }
 0x1c2   :  { %v962_v60 = vadd.f32 %v961_v58, %v234_v56  ;;  %v264_v56 = vld [vmem:[%s3778_s0 + $0x7f8] sm:$0xff]  ;;  %v263_v58 = vld [vmem:[%s3778_s0 + $0x7f0] sm:$0xff] }
 0x1c4   :  { %v963_v62 = vadd.f32 %v962_v60, %v235_v59  ;;  %v999_v60 = vsel %vm683_vm0, %v264_v56, 0.0 }
 0x1c6   :  { %v965_v0 = vadd.f32 %v964_v61, %v963_v62  ;;  %v265_v62 = vld [vmem:[%s3778_s0 + $0x800] sm:$0xff] }
 0x1c8   :  { %v966_v3 = vadd.f32 %v965_v0, %v237_v63  ;;  %v266_v0 = vld [vmem:[%s3778_s0 + $0x808] sm:$0xff] }
 0x1ca   :  { %v967_v5 = vadd.f32 %v966_v3, %v238_v1  ;;  %v268_v1 = vld [vmem:[%s3778_s0 + $0x818] sm:$0xff]  ;;  %v267_v3 = vld [vmem:[%s3778_s0 + $0x810] sm:$0xff] }
 0x1cc   :  { %v968_v7 = vadd.f32 %v967_v5, %v239_v4  ;;  %v1004_v5 = vsel %vm683_vm0, %v268_v1, 0.0 }
 0x1ce   :  { %v970_v9 = vadd.f32 %v969_v6, %v968_v7  ;;  %v269_v7 = vld [vmem:[%s3778_s0 + $0x820] sm:$0xff] }
 0x1d0   :  { %v971_v12 = vadd.f32 %v970_v9, %v241_v8  ;;  %v270_v9 = vld [vmem:[%s3778_s0 + $0x828] sm:$0xff] }
 0x1d2   :  { %v972_v14 = vadd.f32 %v971_v12, %v242_v10  ;;  %v272_v10 = vld [vmem:[%s3778_s0 + $0x838] sm:$0xff]  ;;  %v271_v12 = vld [vmem:[%s3778_s0 + $0x830] sm:$0xff] }
 0x1d4   :  { %v973_v16 = vadd.f32 %v972_v14, %v243_v13  ;;  %v1009_v14 = vsel %vm683_vm0, %v272_v10, 0.0 }
 0x1d6   :  { %v975_v18 = vadd.f32 %v974_v15, %v973_v16  ;;  %v273_v16 = vld [vmem:[%s3778_s0 + $0x840] sm:$0xff] }
 0x1d8   :  { %v976_v21 = vadd.f32 %v975_v18, %v245_v17  ;;  %v274_v18 = vld [vmem:[%s3778_s0 + $0x848] sm:$0xff] }
 0x1da   :  { %v977_v23 = vadd.f32 %v976_v21, %v246_v19  ;;  %v276_v19 = vld [vmem:[%s3778_s0 + $0x858] sm:$0xff]  ;;  %v275_v21 = vld [vmem:[%s3778_s0 + $0x850] sm:$0xff] }
 0x1dc   :  { %v978_v25 = vadd.f32 %v977_v23, %v247_v22  ;;  %v1014_v23 = vsel %vm683_vm0, %v276_v19, 0.0 }
 0x1de   :  { %v980_v27 = vadd.f32 %v979_v24, %v978_v25  ;;  %v277_v25 = vld [vmem:[%s3778_s0 + $0x860] sm:$0xff] }
 0x1e0   :  { %v981_v30 = vadd.f32 %v980_v27, %v249_v26  ;;  %v278_v27 = vld [vmem:[%s3778_s0 + $0x868] sm:$0xff] }
 0x1e2   :  { %v982_v32 = vadd.f32 %v981_v30, %v250_v28  ;;  %v280_v28 = vld [vmem:[%s3778_s0 + $0x878] sm:$0xff]  ;;  %v279_v30 = vld [vmem:[%s3778_s0 + $0x870] sm:$0xff] }
 0x1e4   :  { %v983_v34 = vadd.f32 %v982_v32, %v251_v31  ;;  %v1019_v32 = vsel %vm683_vm0, %v280_v28, 0.0 }
 0x1e6   :  { %v985_v36 = vadd.f32 %v984_v33, %v983_v34  ;;  %v281_v34 = vld [vmem:[%s3778_s0 + $0x880] sm:$0xff] }
 0x1e8   :  { %v986_v39 = vadd.f32 %v985_v36, %v253_v35  ;;  %v282_v36 = vld [vmem:[%s3778_s0 + $0x888] sm:$0xff] }
 0x1ea   :  { %v987_v41 = vadd.f32 %v986_v39, %v254_v37  ;;  %v284_v37 = vld [vmem:[%s3778_s0 + $0x898] sm:$0xff]  ;;  %v283_v39 = vld [vmem:[%s3778_s0 + $0x890] sm:$0xff] }
 0x1ec   :  { %v988_v43 = vadd.f32 %v987_v41, %v255_v40  ;;  %v1024_v41 = vsel %vm683_vm0, %v284_v37, 0.0 }
 0x1ee   :  { %v990_v45 = vadd.f32 %v989_v42, %v988_v43  ;;  %v285_v43 = vld [vmem:[%s3778_s0 + $0x8a0] sm:$0xff] }
 0x1f0   :  { %v991_v48 = vadd.f32 %v990_v45, %v257_v44  ;;  %v286_v45 = vld [vmem:[%s3778_s0 + $0x8a8] sm:$0xff] }
 0x1f2   :  { %v992_v50 = vadd.f32 %v991_v48, %v258_v46  ;;  %v288_v46 = vld [vmem:[%s3778_s0 + $0x8b8] sm:$0xff]  ;;  %v287_v48 = vld [vmem:[%s3778_s0 + $0x8b0] sm:$0xff] }
 0x1f4   :  { %v993_v52 = vadd.f32 %v992_v50, %v259_v49  ;;  %v1029_v50 = vsel %vm683_vm0, %v288_v46, 0.0 }
 0x1f6   :  { %v995_v54 = vadd.f32 %v994_v51, %v993_v52  ;;  %v289_v52 = vld [vmem:[%s3778_s0 + $0x8c0] sm:$0xff] }
 0x1f8   :  { %v996_v57 = vadd.f32 %v995_v54, %v261_v53  ;;  %v290_v54 = vld [vmem:[%s3778_s0 + $0x8c8] sm:$0xff] }
 0x1fa   :  { %v997_v59 = vadd.f32 %v996_v57, %v262_v55  ;;  %v292_v55 = vld [vmem:[%s3778_s0 + $0x8d8] sm:$0xff]  ;;  %v291_v57 = vld [vmem:[%s3778_s0 + $0x8d0] sm:$0xff] }
 0x1fc   :  { %v998_v61 = vadd.f32 %v997_v59, %v263_v58  ;;  %v1034_v59 = vsel %vm683_vm0, %v292_v55, 0.0 }
 0x1fe   :  { %v1000_v63 = vadd.f32 %v999_v60, %v998_v61  ;;  %v293_v61 = vld [vmem:[%s3778_s0 + $0x8e0] sm:$0xff] }
 0x200   :  { %v1001_v2 = vadd.f32 %v1000_v63, %v265_v62  ;;  %v294_v63 = vld [vmem:[%s3778_s0 + $0x8e8] sm:$0xff] }
 0x202   :  { %v1002_v4 = vadd.f32 %v1001_v2, %v266_v0  ;;  %v296_v0 = vld [vmem:[%s3778_s0 + $0x8f8] sm:$0xff]  ;;  %v295_v2 = vld [vmem:[%s3778_s0 + $0x8f0] sm:$0xff] }
 0x204   :  { %v1003_v6 = vadd.f32 %v1002_v4, %v267_v3  ;;  %v1039_v4 = vsel %vm683_vm0, %v296_v0, 0.0 }
 0x206   :  { %v1005_v8 = vadd.f32 %v1004_v5, %v1003_v6  ;;  %v297_v6 = vld [vmem:[%s3778_s0 + $0x900] sm:$0xff] }
 0x208   :  { %v1006_v11 = vadd.f32 %v1005_v8, %v269_v7  ;;  %v298_v8 = vld [vmem:[%s3778_s0 + $0x908] sm:$0xff] }
 0x20a   :  { %v1007_v13 = vadd.f32 %v1006_v11, %v270_v9  ;;  %v300_v9 = vld [vmem:[%s3778_s0 + $0x918] sm:$0xff]  ;;  %v299_v11 = vld [vmem:[%s3778_s0 + $0x910] sm:$0xff] }
 0x20c   :  { %v1008_v15 = vadd.f32 %v1007_v13, %v271_v12  ;;  %v1044_v13 = vsel %vm683_vm0, %v300_v9, 0.0 }
 0x20e   :  { %v1010_v17 = vadd.f32 %v1009_v14, %v1008_v15  ;;  %v301_v15 = vld [vmem:[%s3778_s0 + $0x920] sm:$0xff] }
 0x210   :  { %v1011_v20 = vadd.f32 %v1010_v17, %v273_v16  ;;  %v302_v17 = vld [vmem:[%s3778_s0 + $0x928] sm:$0xff] }
 0x212   :  { %v1012_v22 = vadd.f32 %v1011_v20, %v274_v18  ;;  %v304_v18 = vld [vmem:[%s3778_s0 + $0x938] sm:$0xff]  ;;  %v303_v20 = vld [vmem:[%s3778_s0 + $0x930] sm:$0xff] }
 0x214   :  { %v1013_v24 = vadd.f32 %v1012_v22, %v275_v21  ;;  %v1049_v22 = vsel %vm683_vm0, %v304_v18, 0.0 }
 0x216   :  { %v1015_v26 = vadd.f32 %v1014_v23, %v1013_v24  ;;  %v305_v24 = vld [vmem:[%s3778_s0 + $0x940] sm:$0xff] }
 0x218   :  { %v1016_v29 = vadd.f32 %v1015_v26, %v277_v25  ;;  %v306_v26 = vld [vmem:[%s3778_s0 + $0x948] sm:$0xff] }
 0x21a   :  { %v1017_v31 = vadd.f32 %v1016_v29, %v278_v27  ;;  %v308_v27 = vld [vmem:[%s3778_s0 + $0x958] sm:$0xff]  ;;  %v307_v29 = vld [vmem:[%s3778_s0 + $0x950] sm:$0xff] }
 0x21c   :  { %v1018_v33 = vadd.f32 %v1017_v31, %v279_v30  ;;  %v1054_v31 = vsel %vm683_vm0, %v308_v27, 0.0 }
 0x21e   :  { %v1020_v35 = vadd.f32 %v1019_v32, %v1018_v33  ;;  %v309_v33 = vld [vmem:[%s3778_s0 + $0x960] sm:$0xff] }
 0x220   :  { %v1021_v38 = vadd.f32 %v1020_v35, %v281_v34  ;;  %v310_v35 = vld [vmem:[%s3778_s0 + $0x968] sm:$0xff] }
 0x222   :  { %v1022_v40 = vadd.f32 %v1021_v38, %v282_v36  ;;  %v312_v36 = vld [vmem:[%s3778_s0 + $0x978] sm:$0xff]  ;;  %v311_v38 = vld [vmem:[%s3778_s0 + $0x970] sm:$0xff] }
 0x224   :  { %v1023_v42 = vadd.f32 %v1022_v40, %v283_v39  ;;  %v1059_v40 = vsel %vm683_vm0, %v312_v36, 0.0 }
 0x226   :  { %v1025_v44 = vadd.f32 %v1024_v41, %v1023_v42  ;;  %v313_v42 = vld [vmem:[%s3778_s0 + $0x980] sm:$0xff] }
 0x228   :  { %v1026_v47 = vadd.f32 %v1025_v44, %v285_v43  ;;  %v314_v44 = vld [vmem:[%s3778_s0 + $0x988] sm:$0xff] }
 0x22a   :  { %v1027_v49 = vadd.f32 %v1026_v47, %v286_v45  ;;  %v316_v45 = vld [vmem:[%s3778_s0 + $0x998] sm:$0xff]  ;;  %v315_v47 = vld [vmem:[%s3778_s0 + $0x990] sm:$0xff] }
 0x22c   :  { %v1028_v51 = vadd.f32 %v1027_v49, %v287_v48  ;;  %v1064_v49 = vsel %vm683_vm0, %v316_v45, 0.0 }
 0x22e   :  { %v1030_v53 = vadd.f32 %v1029_v50, %v1028_v51  ;;  %v317_v51 = vld [vmem:[%s3778_s0 + $0x9a0] sm:$0xff] }
 0x230   :  { %v1031_v56 = vadd.f32 %v1030_v53, %v289_v52  ;;  %v318_v53 = vld [vmem:[%s3778_s0 + $0x9a8] sm:$0xff] }
 0x232   :  { %v1032_v58 = vadd.f32 %v1031_v56, %v290_v54  ;;  %v320_v54 = vld [vmem:[%s3778_s0 + $0x9b8] sm:$0xff]  ;;  %v319_v56 = vld [vmem:[%s3778_s0 + $0x9b0] sm:$0xff] }
 0x234   :  { %v1033_v60 = vadd.f32 %v1032_v58, %v291_v57  ;;  %v1069_v58 = vsel %vm683_vm0, %v320_v54, 0.0 }
 0x236   :  { %v1035_v62 = vadd.f32 %v1034_v59, %v1033_v60  ;;  %v321_v60 = vld [vmem:[%s3778_s0 + $0x9c0] sm:$0xff] }
 0x238   :  { %v1036_v1 = vadd.f32 %v1035_v62, %v293_v61  ;;  %v322_v62 = vld [vmem:[%s3778_s0 + $0x9c8] sm:$0xff] }
 0x23a   :  { %v1037_v3 = vadd.f32 %v1036_v1, %v294_v63  ;;  %v324_v63 = vld [vmem:[%s3778_s0 + $0x9d8] sm:$0xff]  ;;  %v323_v1 = vld [vmem:[%s3778_s0 + $0x9d0] sm:$0xff] }
 0x23c   :  { %v1038_v5 = vadd.f32 %v1037_v3, %v295_v2  ;;  %v1074_v3 = vsel %vm683_vm0, %v324_v63, 0.0 }
 0x23e   :  { %v1040_v7 = vadd.f32 %v1039_v4, %v1038_v5  ;;  %v325_v5 = vld [vmem:[%s3778_s0 + $0x9e0] sm:$0xff] }
 0x240   :  { %v1041_v10 = vadd.f32 %v1040_v7, %v297_v6  ;;  %v326_v7 = vld [vmem:[%s3778_s0 + $0x9e8] sm:$0xff] }
 0x242   :  { %v1042_v12 = vadd.f32 %v1041_v10, %v298_v8  ;;  %v328_v8 = vld [vmem:[%s3778_s0 + $0x9f8] sm:$0xff]  ;;  %v327_v10 = vld [vmem:[%s3778_s0 + $0x9f0] sm:$0xff] }
 0x244   :  { %v1043_v14 = vadd.f32 %v1042_v12, %v299_v11  ;;  %v1079_v12 = vsel %vm683_vm0, %v328_v8, 0.0 }
 0x246   :  { %v1045_v16 = vadd.f32 %v1044_v13, %v1043_v14  ;;  %v329_v14 = vld [vmem:[%s3778_s0 + $0xa00] sm:$0xff] }
 0x248   :  { %v1046_v19 = vadd.f32 %v1045_v16, %v301_v15  ;;  %v330_v16 = vld [vmem:[%s3778_s0 + $0xa08] sm:$0xff] }
 0x24a   :  { %v1047_v21 = vadd.f32 %v1046_v19, %v302_v17  ;;  %v332_v17 = vld [vmem:[%s3778_s0 + $0xa18] sm:$0xff]  ;;  %v331_v19 = vld [vmem:[%s3778_s0 + $0xa10] sm:$0xff] }
 0x24c   :  { %v1048_v23 = vadd.f32 %v1047_v21, %v303_v20  ;;  %v1084_v21 = vsel %vm683_vm0, %v332_v17, 0.0 }
 0x24e   :  { %v1050_v25 = vadd.f32 %v1049_v22, %v1048_v23  ;;  %v333_v23 = vld [vmem:[%s3778_s0 + $0xa20] sm:$0xff] }
 0x250   :  { %v1051_v28 = vadd.f32 %v1050_v25, %v305_v24  ;;  %v334_v25 = vld [vmem:[%s3778_s0 + $0xa28] sm:$0xff] }
 0x252   :  { %v1052_v30 = vadd.f32 %v1051_v28, %v306_v26  ;;  %v336_v26 = vld [vmem:[%s3778_s0 + $0xa38] sm:$0xff]  ;;  %v335_v28 = vld [vmem:[%s3778_s0 + $0xa30] sm:$0xff] }
 0x254   :  { %v1053_v32 = vadd.f32 %v1052_v30, %v307_v29  ;;  %v1089_v30 = vsel %vm683_vm0, %v336_v26, 0.0 }
 0x256   :  { %v1055_v34 = vadd.f32 %v1054_v31, %v1053_v32  ;;  %v337_v32 = vld [vmem:[%s3778_s0 + $0xa40] sm:$0xff] }
 0x258   :  { %v1056_v37 = vadd.f32 %v1055_v34, %v309_v33  ;;  %v338_v34 = vld [vmem:[%s3778_s0 + $0xa48] sm:$0xff] }
 0x25a   :  { %v1057_v39 = vadd.f32 %v1056_v37, %v310_v35  ;;  %v340_v35 = vld [vmem:[%s3778_s0 + $0xa58] sm:$0xff]  ;;  %v339_v37 = vld [vmem:[%s3778_s0 + $0xa50] sm:$0xff] }
 0x25c   :  { %v1058_v41 = vadd.f32 %v1057_v39, %v311_v38  ;;  %v1094_v39 = vsel %vm683_vm0, %v340_v35, 0.0 }
 0x25e   :  { %v1060_v43 = vadd.f32 %v1059_v40, %v1058_v41  ;;  %v341_v41 = vld [vmem:[%s3778_s0 + $0xa60] sm:$0xff] }
 0x260   :  { %v1061_v46 = vadd.f32 %v1060_v43, %v313_v42  ;;  %v342_v43 = vld [vmem:[%s3778_s0 + $0xa68] sm:$0xff] }
 0x262   :  { %v1062_v48 = vadd.f32 %v1061_v46, %v314_v44  ;;  %v344_v44 = vld [vmem:[%s3778_s0 + $0xa78] sm:$0xff]  ;;  %v343_v46 = vld [vmem:[%s3778_s0 + $0xa70] sm:$0xff] }
 0x264   :  { %v1063_v50 = vadd.f32 %v1062_v48, %v315_v47  ;;  %v1099_v48 = vsel %vm683_vm0, %v344_v44, 0.0 }
 0x266   :  { %v1065_v52 = vadd.f32 %v1064_v49, %v1063_v50  ;;  %v345_v50 = vld [vmem:[%s3778_s0 + $0xa80] sm:$0xff] }
 0x268   :  { %v1066_v55 = vadd.f32 %v1065_v52, %v317_v51  ;;  %v346_v52 = vld [vmem:[%s3778_s0 + $0xa88] sm:$0xff] }
 0x26a   :  { %v1067_v57 = vadd.f32 %v1066_v55, %v318_v53  ;;  %v348_v53 = vld [vmem:[%s3778_s0 + $0xa98] sm:$0xff]  ;;  %v347_v55 = vld [vmem:[%s3778_s0 + $0xa90] sm:$0xff] }
 0x26c   :  { %v1068_v59 = vadd.f32 %v1067_v57, %v319_v56  ;;  %v1104_v57 = vsel %vm683_vm0, %v348_v53, 0.0 }
 0x26e   :  { %v1070_v61 = vadd.f32 %v1069_v58, %v1068_v59  ;;  %v349_v59 = vld [vmem:[%s3778_s0 + $0xaa0] sm:$0xff] }
 0x270   :  { %v1071_v0 = vadd.f32 %v1070_v61, %v321_v60  ;;  %v350_v61 = vld [vmem:[%s3778_s0 + $0xaa8] sm:$0xff] }
 0x272   :  { %v1072_v2 = vadd.f32 %v1071_v0, %v322_v62  ;;  %v352_v62 = vld [vmem:[%s3778_s0 + $0xab8] sm:$0xff]  ;;  %v351_v0 = vld [vmem:[%s3778_s0 + $0xab0] sm:$0xff] }
 0x274   :  { %v1073_v4 = vadd.f32 %v1072_v2, %v323_v1  ;;  %v1109_v2 = vsel %vm683_vm0, %v352_v62, 0.0 }
 0x276   :  { %v1075_v6 = vadd.f32 %v1074_v3, %v1073_v4  ;;  %v353_v4 = vld [vmem:[%s3778_s0 + $0xac0] sm:$0xff] }
 0x278   :  { %v1076_v9 = vadd.f32 %v1075_v6, %v325_v5  ;;  %v354_v6 = vld [vmem:[%s3778_s0 + $0xac8] sm:$0xff] }
 0x27a   :  { %v1077_v11 = vadd.f32 %v1076_v9, %v326_v7  ;;  %v356_v7 = vld [vmem:[%s3778_s0 + $0xad8] sm:$0xff]  ;;  %v355_v9 = vld [vmem:[%s3778_s0 + $0xad0] sm:$0xff] }
 0x27c   :  { %v1078_v13 = vadd.f32 %v1077_v11, %v327_v10  ;;  %v1114_v11 = vsel %vm683_vm0, %v356_v7, 0.0 }
 0x27e   :  { %v1080_v15 = vadd.f32 %v1079_v12, %v1078_v13  ;;  %v357_v13 = vld [vmem:[%s3778_s0 + $0xae0] sm:$0xff] }
 0x280   :  { %v1081_v18 = vadd.f32 %v1080_v15, %v329_v14  ;;  %v358_v15 = vld [vmem:[%s3778_s0 + $0xae8] sm:$0xff] }
 0x282   :  { %v1082_v20 = vadd.f32 %v1081_v18, %v330_v16  ;;  %v360_v16 = vld [vmem:[%s3778_s0 + $0xaf8] sm:$0xff]  ;;  %v359_v18 = vld [vmem:[%s3778_s0 + $0xaf0] sm:$0xff] }
 0x284   :  { %v1083_v22 = vadd.f32 %v1082_v20, %v331_v19  ;;  %v1119_v20 = vsel %vm683_vm0, %v360_v16, 0.0 }
 0x286   :  { %v1085_v24 = vadd.f32 %v1084_v21, %v1083_v22  ;;  %v361_v22 = vld [vmem:[%s3778_s0 + $0xb00] sm:$0xff] }
 0x288   :  { %v1086_v27 = vadd.f32 %v1085_v24, %v333_v23  ;;  %v362_v24 = vld [vmem:[%s3778_s0 + $0xb08] sm:$0xff] }
 0x28a   :  { %v1087_v29 = vadd.f32 %v1086_v27, %v334_v25  ;;  %v364_v25 = vld [vmem:[%s3778_s0 + $0xb18] sm:$0xff]  ;;  %v363_v27 = vld [vmem:[%s3778_s0 + $0xb10] sm:$0xff] }
 0x28c   :  { %v1088_v31 = vadd.f32 %v1087_v29, %v335_v28  ;;  %v1124_v29 = vsel %vm683_vm0, %v364_v25, 0.0 }
 0x28e   :  { %v1090_v33 = vadd.f32 %v1089_v30, %v1088_v31  ;;  %v365_v31 = vld [vmem:[%s3778_s0 + $0xb20] sm:$0xff] }
 0x290   :  { %v1091_v36 = vadd.f32 %v1090_v33, %v337_v32  ;;  %v366_v33 = vld [vmem:[%s3778_s0 + $0xb28] sm:$0xff] }
 0x292   :  { %v1092_v38 = vadd.f32 %v1091_v36, %v338_v34  ;;  %v368_v34 = vld [vmem:[%s3778_s0 + $0xb38] sm:$0xff]  ;;  %v367_v36 = vld [vmem:[%s3778_s0 + $0xb30] sm:$0xff] }
 0x294   :  { %v1093_v40 = vadd.f32 %v1092_v38, %v339_v37  ;;  %v1129_v38 = vsel %vm683_vm0, %v368_v34, 0.0 }
 0x296   :  { %v1095_v42 = vadd.f32 %v1094_v39, %v1093_v40  ;;  %v369_v40 = vld [vmem:[%s3778_s0 + $0xb40] sm:$0xff] }
 0x298   :  { %v1096_v45 = vadd.f32 %v1095_v42, %v341_v41  ;;  %v370_v42 = vld [vmem:[%s3778_s0 + $0xb48] sm:$0xff] }
 0x29a   :  { %v1097_v47 = vadd.f32 %v1096_v45, %v342_v43  ;;  %v372_v43 = vld [vmem:[%s3778_s0 + $0xb58] sm:$0xff]  ;;  %v371_v45 = vld [vmem:[%s3778_s0 + $0xb50] sm:$0xff] }
 0x29c   :  { %v1098_v49 = vadd.f32 %v1097_v47, %v343_v46  ;;  %v1134_v47 = vsel %vm683_vm0, %v372_v43, 0.0 }
 0x29e   :  { %v1100_v51 = vadd.f32 %v1099_v48, %v1098_v49  ;;  %v373_v49 = vld [vmem:[%s3778_s0 + $0xb60] sm:$0xff] }
 0x2a0   :  { %v1101_v54 = vadd.f32 %v1100_v51, %v345_v50  ;;  %v374_v51 = vld [vmem:[%s3778_s0 + $0xb68] sm:$0xff] }
 0x2a2   :  { %v1102_v56 = vadd.f32 %v1101_v54, %v346_v52  ;;  %v376_v52 = vld [vmem:[%s3778_s0 + $0xb78] sm:$0xff]  ;;  %v375_v54 = vld [vmem:[%s3778_s0 + $0xb70] sm:$0xff] }
 0x2a4   :  { %v1103_v58 = vadd.f32 %v1102_v56, %v347_v55  ;;  %v1139_v56 = vsel %vm683_vm0, %v376_v52, 0.0 }
 0x2a6   :  { %v1105_v60 = vadd.f32 %v1104_v57, %v1103_v58  ;;  %v377_v58 = vld [vmem:[%s3778_s0 + $0xb80] sm:$0xff] }
 0x2a8   :  { %v1106_v63 = vadd.f32 %v1105_v60, %v349_v59  ;;  %v378_v60 = vld [vmem:[%s3778_s0 + $0xb88] sm:$0xff] }
 0x2aa   :  { %v1107_v1 = vadd.f32 %v1106_v63, %v350_v61  ;;  %v380_v61 = vld [vmem:[%s3778_s0 + $0xb98] sm:$0xff]  ;;  %v379_v63 = vld [vmem:[%s3778_s0 + $0xb90] sm:$0xff] }
 0x2ac   :  { %v1108_v3 = vadd.f32 %v1107_v1, %v351_v0  ;;  %v1144_v1 = vsel %vm683_vm0, %v380_v61, 0.0 }
 0x2ae   :  { %v1110_v5 = vadd.f32 %v1109_v2, %v1108_v3  ;;  %v381_v3 = vld [vmem:[%s3778_s0 + $0xba0] sm:$0xff] }
 0x2b0   :  { %v1111_v8 = vadd.f32 %v1110_v5, %v353_v4  ;;  %v382_v5 = vld [vmem:[%s3778_s0 + $0xba8] sm:$0xff] }
 0x2b2   :  { %v1112_v10 = vadd.f32 %v1111_v8, %v354_v6  ;;  %v384_v6 = vld [vmem:[%s3778_s0 + $0xbb8] sm:$0xff]  ;;  %v383_v8 = vld [vmem:[%s3778_s0 + $0xbb0] sm:$0xff] }
 0x2b4   :  { %v1113_v12 = vadd.f32 %v1112_v10, %v355_v9  ;;  %v1149_v10 = vsel %vm683_vm0, %v384_v6, 0.0 }
 0x2b6   :  { %v1115_v14 = vadd.f32 %v1114_v11, %v1113_v12  ;;  %v385_v12 = vld [vmem:[%s3778_s0 + $0xbc0] sm:$0xff] }
 0x2b8   :  { %v1116_v17 = vadd.f32 %v1115_v14, %v357_v13  ;;  %v386_v14 = vld [vmem:[%s3778_s0 + $0xbc8] sm:$0xff] }
 0x2ba   :  { %v1117_v19 = vadd.f32 %v1116_v17, %v358_v15  ;;  %v388_v15 = vld [vmem:[%s3778_s0 + $0xbd8] sm:$0xff]  ;;  %v387_v17 = vld [vmem:[%s3778_s0 + $0xbd0] sm:$0xff] }
 0x2bc   :  { %v1118_v21 = vadd.f32 %v1117_v19, %v359_v18  ;;  %v1154_v19 = vsel %vm683_vm0, %v388_v15, 0.0 }
 0x2be   :  { %v1120_v23 = vadd.f32 %v1119_v20, %v1118_v21  ;;  %v389_v21 = vld [vmem:[%s3778_s0 + $0xbe0] sm:$0xff] }
 0x2c0   :  { %v1121_v26 = vadd.f32 %v1120_v23, %v361_v22  ;;  %v390_v23 = vld [vmem:[%s3778_s0 + $0xbe8] sm:$0xff] }
 0x2c2   :  { %v1122_v28 = vadd.f32 %v1121_v26, %v362_v24  ;;  %v392_v24 = vld [vmem:[%s3778_s0 + $0xbf8] sm:$0xff]  ;;  %v391_v26 = vld [vmem:[%s3778_s0 + $0xbf0] sm:$0xff] }
 0x2c4   :  { %v1123_v30 = vadd.f32 %v1122_v28, %v363_v27  ;;  %v1159_v28 = vsel %vm683_vm0, %v392_v24, 0.0 }
 0x2c6   :  { %v1125_v32 = vadd.f32 %v1124_v29, %v1123_v30  ;;  %v393_v30 = vld [vmem:[%s3778_s0 + $0xc00] sm:$0xff] }
 0x2c8   :  { %v1126_v35 = vadd.f32 %v1125_v32, %v365_v31  ;;  %v394_v32 = vld [vmem:[%s3778_s0 + $0xc08] sm:$0xff] }
 0x2ca   :  { %v1127_v37 = vadd.f32 %v1126_v35, %v366_v33  ;;  %v396_v33 = vld [vmem:[%s3778_s0 + $0xc18] sm:$0xff]  ;;  %v395_v35 = vld [vmem:[%s3778_s0 + $0xc10] sm:$0xff] }
 0x2cc   :  { %v1128_v39 = vadd.f32 %v1127_v37, %v367_v36  ;;  %v1164_v37 = vsel %vm683_vm0, %v396_v33, 0.0 }
 0x2ce   :  { %v1130_v41 = vadd.f32 %v1129_v38, %v1128_v39  ;;  %v397_v39 = vld [vmem:[%s3778_s0 + $0xc20] sm:$0xff] }
 0x2d0   :  { %v1131_v44 = vadd.f32 %v1130_v41, %v369_v40  ;;  %v398_v41 = vld [vmem:[%s3778_s0 + $0xc28] sm:$0xff] }
 0x2d2   :  { %v1132_v46 = vadd.f32 %v1131_v44, %v370_v42  ;;  %v400_v42 = vld [vmem:[%s3778_s0 + $0xc38] sm:$0xff]  ;;  %v399_v44 = vld [vmem:[%s3778_s0 + $0xc30] sm:$0xff] }
 0x2d4   :  { %v1133_v48 = vadd.f32 %v1132_v46, %v371_v45  ;;  %v1169_v46 = vsel %vm683_vm0, %v400_v42, 0.0 }
 0x2d6   :  { %v1135_v50 = vadd.f32 %v1134_v47, %v1133_v48  ;;  %v401_v48 = vld [vmem:[%s3778_s0 + $0xc40] sm:$0xff] }
 0x2d8   :  { %v1136_v53 = vadd.f32 %v1135_v50, %v373_v49  ;;  %v402_v50 = vld [vmem:[%s3778_s0 + $0xc48] sm:$0xff] }
 0x2da   :  { %v1137_v55 = vadd.f32 %v1136_v53, %v374_v51  ;;  %v404_v51 = vld [vmem:[%s3778_s0 + $0xc58] sm:$0xff]  ;;  %v403_v53 = vld [vmem:[%s3778_s0 + $0xc50] sm:$0xff] }
 0x2dc   :  { %v1138_v57 = vadd.f32 %v1137_v55, %v375_v54  ;;  %v1174_v55 = vsel %vm683_vm0, %v404_v51, 0.0 }
 0x2de   :  { %v1140_v59 = vadd.f32 %v1139_v56, %v1138_v57  ;;  %v405_v57 = vld [vmem:[%s3778_s0 + $0xc60] sm:$0xff] }
 0x2e0   :  { %v1141_v62 = vadd.f32 %v1140_v59, %v377_v58  ;;  %v406_v59 = vld [vmem:[%s3778_s0 + $0xc68] sm:$0xff] }
 0x2e2   :  { %v1142_v0 = vadd.f32 %v1141_v62, %v378_v60  ;;  %v408_v60 = vld [vmem:[%s3778_s0 + $0xc78] sm:$0xff]  ;;  %v407_v62 = vld [vmem:[%s3778_s0 + $0xc70] sm:$0xff] }
 0x2e4   :  { %v1143_v2 = vadd.f32 %v1142_v0, %v379_v63  ;;  %v1179_v0 = vsel %vm683_vm0, %v408_v60, 0.0 }
 0x2e6   :  { %v1145_v4 = vadd.f32 %v1144_v1, %v1143_v2  ;;  %v409_v2 = vld [vmem:[%s3778_s0 + $0xc80] sm:$0xff] }
 0x2e8   :  { %v1146_v7 = vadd.f32 %v1145_v4, %v381_v3  ;;  %v410_v4 = vld [vmem:[%s3778_s0 + $0xc88] sm:$0xff] }
 0x2ea   :  { %v1147_v9 = vadd.f32 %v1146_v7, %v382_v5  ;;  %v412_v5 = vld [vmem:[%s3778_s0 + $0xc98] sm:$0xff]  ;;  %v411_v7 = vld [vmem:[%s3778_s0 + $0xc90] sm:$0xff] }
 0x2ec   :  { %v1148_v11 = vadd.f32 %v1147_v9, %v383_v8  ;;  %v1184_v9 = vsel %vm683_vm0, %v412_v5, 0.0 }
 0x2ee   :  { %v1150_v13 = vadd.f32 %v1149_v10, %v1148_v11  ;;  %v413_v11 = vld [vmem:[%s3778_s0 + $0xca0] sm:$0xff] }
 0x2f0   :  { %v1151_v16 = vadd.f32 %v1150_v13, %v385_v12  ;;  %v414_v13 = vld [vmem:[%s3778_s0 + $0xca8] sm:$0xff] }
 0x2f2   :  { %v1152_v18 = vadd.f32 %v1151_v16, %v386_v14  ;;  %v416_v14 = vld [vmem:[%s3778_s0 + $0xcb8] sm:$0xff]  ;;  %v415_v16 = vld [vmem:[%s3778_s0 + $0xcb0] sm:$0xff] }
 0x2f4   :  { %v1153_v20 = vadd.f32 %v1152_v18, %v387_v17  ;;  %v1189_v18 = vsel %vm683_vm0, %v416_v14, 0.0 }
 0x2f6   :  { %v1155_v22 = vadd.f32 %v1154_v19, %v1153_v20  ;;  %v417_v20 = vld [vmem:[%s3778_s0 + $0xcc0] sm:$0xff] }
 0x2f8   :  { %v1156_v25 = vadd.f32 %v1155_v22, %v389_v21  ;;  %v418_v22 = vld [vmem:[%s3778_s0 + $0xcc8] sm:$0xff] }
 0x2fa   :  { %v1157_v27 = vadd.f32 %v1156_v25, %v390_v23  ;;  %v420_v23 = vld [vmem:[%s3778_s0 + $0xcd8] sm:$0xff]  ;;  %v419_v25 = vld [vmem:[%s3778_s0 + $0xcd0] sm:$0xff] }
 0x2fc   :  { %v1158_v29 = vadd.f32 %v1157_v27, %v391_v26  ;;  %v1194_v27 = vsel %vm683_vm0, %v420_v23, 0.0 }
 0x2fe   :  { %v1160_v31 = vadd.f32 %v1159_v28, %v1158_v29  ;;  %v421_v29 = vld [vmem:[%s3778_s0 + $0xce0] sm:$0xff] }
 0x300   :  { %v1161_v34 = vadd.f32 %v1160_v31, %v393_v30  ;;  %v422_v31 = vld [vmem:[%s3778_s0 + $0xce8] sm:$0xff] }
 0x302   :  { %v1162_v36 = vadd.f32 %v1161_v34, %v394_v32  ;;  %v424_v32 = vld [vmem:[%s3778_s0 + $0xcf8] sm:$0xff]  ;;  %v423_v34 = vld [vmem:[%s3778_s0 + $0xcf0] sm:$0xff] }
 0x304   :  { %v1163_v38 = vadd.f32 %v1162_v36, %v395_v35  ;;  %v1199_v36 = vsel %vm683_vm0, %v424_v32, 0.0 }
 0x306   :  { %v1165_v40 = vadd.f32 %v1164_v37, %v1163_v38  ;;  %v425_v38 = vld [vmem:[%s3778_s0 + $0xd00] sm:$0xff] }
 0x308   :  { %v1166_v43 = vadd.f32 %v1165_v40, %v397_v39  ;;  %v426_v40 = vld [vmem:[%s3778_s0 + $0xd08] sm:$0xff] }
 0x30a   :  { %v1167_v45 = vadd.f32 %v1166_v43, %v398_v41  ;;  %v428_v41 = vld [vmem:[%s3778_s0 + $0xd18] sm:$0xff]  ;;  %v427_v43 = vld [vmem:[%s3778_s0 + $0xd10] sm:$0xff] }
 0x30c   :  { %v1168_v47 = vadd.f32 %v1167_v45, %v399_v44  ;;  %v1204_v45 = vsel %vm683_vm0, %v428_v41, 0.0 }
 0x30e   :  { %v1170_v49 = vadd.f32 %v1169_v46, %v1168_v47  ;;  %v429_v47 = vld [vmem:[%s3778_s0 + $0xd20] sm:$0xff] }
 0x310   :  { %v1171_v52 = vadd.f32 %v1170_v49, %v401_v48  ;;  %v430_v49 = vld [vmem:[%s3778_s0 + $0xd28] sm:$0xff] }
 0x312   :  { %v1172_v54 = vadd.f32 %v1171_v52, %v402_v50  ;;  %v432_v50 = vld [vmem:[%s3778_s0 + $0xd38] sm:$0xff]  ;;  %v431_v52 = vld [vmem:[%s3778_s0 + $0xd30] sm:$0xff] }
 0x314   :  { %v1173_v56 = vadd.f32 %v1172_v54, %v403_v53  ;;  %v1209_v54 = vsel %vm683_vm0, %v432_v50, 0.0 }
 0x316   :  { %v1175_v58 = vadd.f32 %v1174_v55, %v1173_v56  ;;  %v433_v56 = vld [vmem:[%s3778_s0 + $0xd40] sm:$0xff] }
 0x318   :  { %v1176_v61 = vadd.f32 %v1175_v58, %v405_v57  ;;  %v434_v58 = vld [vmem:[%s3778_s0 + $0xd48] sm:$0xff] }
 0x31a   :  { %v1177_v63 = vadd.f32 %v1176_v61, %v406_v59  ;;  %v436_v59 = vld [vmem:[%s3778_s0 + $0xd58] sm:$0xff]  ;;  %v435_v61 = vld [vmem:[%s3778_s0 + $0xd50] sm:$0xff] }
 0x31c   :  { %v1178_v1 = vadd.f32 %v1177_v63, %v407_v62  ;;  %v1214_v63 = vsel %vm683_vm0, %v436_v59, 0.0 }
 0x31e   :  { %v1180_v3 = vadd.f32 %v1179_v0, %v1178_v1  ;;  %v437_v1 = vld [vmem:[%s3778_s0 + $0xd60] sm:$0xff] }
 0x320   :  { %v1181_v6 = vadd.f32 %v1180_v3, %v409_v2  ;;  %v438_v3 = vld [vmem:[%s3778_s0 + $0xd68] sm:$0xff] }
 0x322   :  { %v1182_v8 = vadd.f32 %v1181_v6, %v410_v4  ;;  %v440_v4 = vld [vmem:[%s3778_s0 + $0xd78] sm:$0xff]  ;;  %v439_v6 = vld [vmem:[%s3778_s0 + $0xd70] sm:$0xff] }
 0x324   :  { %v1183_v10 = vadd.f32 %v1182_v8, %v411_v7  ;;  %v1219_v8 = vsel %vm683_vm0, %v440_v4, 0.0 }
 0x326   :  { %v1185_v12 = vadd.f32 %v1184_v9, %v1183_v10  ;;  %v441_v10 = vld [vmem:[%s3778_s0 + $0xd80] sm:$0xff] }
 0x328   :  { %v1186_v15 = vadd.f32 %v1185_v12, %v413_v11  ;;  %v442_v12 = vld [vmem:[%s3778_s0 + $0xd88] sm:$0xff] }
 0x32a   :  { %v1187_v17 = vadd.f32 %v1186_v15, %v414_v13  ;;  %v444_v13 = vld [vmem:[%s3778_s0 + $0xd98] sm:$0xff]  ;;  %v443_v15 = vld [vmem:[%s3778_s0 + $0xd90] sm:$0xff] }
 0x32c   :  { %v1188_v19 = vadd.f32 %v1187_v17, %v415_v16  ;;  %v1224_v17 = vsel %vm683_vm0, %v444_v13, 0.0 }
 0x32e   :  { %v1190_v21 = vadd.f32 %v1189_v18, %v1188_v19  ;;  %v445_v19 = vld [vmem:[%s3778_s0 + $0xda0] sm:$0xff] }
 0x330   :  { %v1191_v24 = vadd.f32 %v1190_v21, %v417_v20  ;;  %v446_v21 = vld [vmem:[%s3778_s0 + $0xda8] sm:$0xff] }
 0x332   :  { %v1192_v26 = vadd.f32 %v1191_v24, %v418_v22  ;;  %v448_v22 = vld [vmem:[%s3778_s0 + $0xdb8] sm:$0xff]  ;;  %v447_v24 = vld [vmem:[%s3778_s0 + $0xdb0] sm:$0xff] }
 0x334   :  { %v1193_v28 = vadd.f32 %v1192_v26, %v419_v25  ;;  %v1229_v26 = vsel %vm683_vm0, %v448_v22, 0.0 }
 0x336   :  { %v1195_v30 = vadd.f32 %v1194_v27, %v1193_v28  ;;  %v449_v28 = vld [vmem:[%s3778_s0 + $0xdc0] sm:$0xff] }
 0x338   :  { %v1196_v33 = vadd.f32 %v1195_v30, %v421_v29  ;;  %v450_v30 = vld [vmem:[%s3778_s0 + $0xdc8] sm:$0xff] }
 0x33a   :  { %v1197_v35 = vadd.f32 %v1196_v33, %v422_v31  ;;  %v452_v31 = vld [vmem:[%s3778_s0 + $0xdd8] sm:$0xff]  ;;  %v451_v33 = vld [vmem:[%s3778_s0 + $0xdd0] sm:$0xff] }
 0x33c   :  { %v1198_v37 = vadd.f32 %v1197_v35, %v423_v34  ;;  %v1234_v35 = vsel %vm683_vm0, %v452_v31, 0.0 }
 0x33e   :  { %v1200_v39 = vadd.f32 %v1199_v36, %v1198_v37  ;;  %v453_v37 = vld [vmem:[%s3778_s0 + $0xde0] sm:$0xff] }
 0x340   :  { %v1201_v42 = vadd.f32 %v1200_v39, %v425_v38  ;;  %v454_v39 = vld [vmem:[%s3778_s0 + $0xde8] sm:$0xff] }
 0x342   :  { %v1202_v44 = vadd.f32 %v1201_v42, %v426_v40  ;;  %v456_v40 = vld [vmem:[%s3778_s0 + $0xdf8] sm:$0xff]  ;;  %v455_v42 = vld [vmem:[%s3778_s0 + $0xdf0] sm:$0xff] }
 0x344   :  { %v1203_v46 = vadd.f32 %v1202_v44, %v427_v43  ;;  %v1239_v44 = vsel %vm683_vm0, %v456_v40, 0.0 }
 0x346   :  { %v1205_v48 = vadd.f32 %v1204_v45, %v1203_v46  ;;  %v457_v46 = vld [vmem:[%s3778_s0 + $0xe00] sm:$0xff] }
 0x348   :  { %v1206_v51 = vadd.f32 %v1205_v48, %v429_v47  ;;  %v458_v48 = vld [vmem:[%s3778_s0 + $0xe08] sm:$0xff] }
 0x34a   :  { %v1207_v53 = vadd.f32 %v1206_v51, %v430_v49  ;;  %v460_v49 = vld [vmem:[%s3778_s0 + $0xe18] sm:$0xff]  ;;  %v459_v51 = vld [vmem:[%s3778_s0 + $0xe10] sm:$0xff] }
 0x34c   :  { %v1208_v55 = vadd.f32 %v1207_v53, %v431_v52  ;;  %v1244_v53 = vsel %vm683_vm0, %v460_v49, 0.0 }
 0x34e   :  { %v1210_v57 = vadd.f32 %v1209_v54, %v1208_v55  ;;  %v461_v55 = vld [vmem:[%s3778_s0 + $0xe20] sm:$0xff] }
 0x350   :  { %v1211_v60 = vadd.f32 %v1210_v57, %v433_v56  ;;  %v462_v57 = vld [vmem:[%s3778_s0 + $0xe28] sm:$0xff] }
 0x352   :  { %v1212_v62 = vadd.f32 %v1211_v60, %v434_v58  ;;  %v464_v58 = vld [vmem:[%s3778_s0 + $0xe38] sm:$0xff]  ;;  %v463_v60 = vld [vmem:[%s3778_s0 + $0xe30] sm:$0xff] }
 0x354   :  { %v1213_v0 = vadd.f32 %v1212_v62, %v435_v61  ;;  %v1249_v62 = vsel %vm683_vm0, %v464_v58, 0.0 }
 0x356   :  { %v1215_v2 = vadd.f32 %v1214_v63, %v1213_v0  ;;  %v465_v0 = vld [vmem:[%s3778_s0 + $0xe40] sm:$0xff] }
 0x358   :  { %v1216_v5 = vadd.f32 %v1215_v2, %v437_v1  ;;  %v466_v2 = vld [vmem:[%s3778_s0 + $0xe48] sm:$0xff] }
 0x35a   :  { %v1217_v7 = vadd.f32 %v1216_v5, %v438_v3  ;;  %v468_v3 = vld [vmem:[%s3778_s0 + $0xe58] sm:$0xff]  ;;  %v467_v5 = vld [vmem:[%s3778_s0 + $0xe50] sm:$0xff] }
 0x35c   :  { %v1218_v9 = vadd.f32 %v1217_v7, %v439_v6  ;;  %v1254_v7 = vsel %vm683_vm0, %v468_v3, 0.0 }
 0x35e   :  { %v1220_v11 = vadd.f32 %v1219_v8, %v1218_v9  ;;  %v469_v9 = vld [vmem:[%s3778_s0 + $0xe60] sm:$0xff] }
 0x360   :  { %v1221_v14 = vadd.f32 %v1220_v11, %v441_v10  ;;  %v470_v11 = vld [vmem:[%s3778_s0 + $0xe68] sm:$0xff] }
 0x362   :  { %v1222_v16 = vadd.f32 %v1221_v14, %v442_v12  ;;  %v472_v12 = vld [vmem:[%s3778_s0 + $0xe78] sm:$0xff]  ;;  %v471_v14 = vld [vmem:[%s3778_s0 + $0xe70] sm:$0xff] }
 0x364   :  { %v1223_v18 = vadd.f32 %v1222_v16, %v443_v15  ;;  %v1259_v16 = vsel %vm683_vm0, %v472_v12, 0.0 }
 0x366   :  { %v1225_v20 = vadd.f32 %v1224_v17, %v1223_v18  ;;  %v473_v18 = vld [vmem:[%s3778_s0 + $0xe80] sm:$0xff] }
 0x368   :  { %v1226_v23 = vadd.f32 %v1225_v20, %v445_v19  ;;  %v474_v20 = vld [vmem:[%s3778_s0 + $0xe88] sm:$0xff] }
 0x36a   :  { %v1227_v25 = vadd.f32 %v1226_v23, %v446_v21  ;;  %v476_v21 = vld [vmem:[%s3778_s0 + $0xe98] sm:$0xff]  ;;  %v475_v23 = vld [vmem:[%s3778_s0 + $0xe90] sm:$0xff] }
 0x36c   :  { %v1228_v27 = vadd.f32 %v1227_v25, %v447_v24  ;;  %v1264_v25 = vsel %vm683_vm0, %v476_v21, 0.0 }
 0x36e   :  { %v1230_v29 = vadd.f32 %v1229_v26, %v1228_v27  ;;  %v477_v27 = vld [vmem:[%s3778_s0 + $0xea0] sm:$0xff] }
 0x370   :  { %v1231_v32 = vadd.f32 %v1230_v29, %v449_v28  ;;  %v478_v29 = vld [vmem:[%s3778_s0 + $0xea8] sm:$0xff] }
 0x372   :  { %v1232_v34 = vadd.f32 %v1231_v32, %v450_v30  ;;  %v480_v30 = vld [vmem:[%s3778_s0 + $0xeb8] sm:$0xff]  ;;  %v479_v32 = vld [vmem:[%s3778_s0 + $0xeb0] sm:$0xff] }
 0x374   :  { %v1233_v36 = vadd.f32 %v1232_v34, %v451_v33  ;;  %v1269_v34 = vsel %vm683_vm0, %v480_v30, 0.0 }
 0x376   :  { %v1235_v38 = vadd.f32 %v1234_v35, %v1233_v36  ;;  %v481_v36 = vld [vmem:[%s3778_s0 + $0xec0] sm:$0xff] }
 0x378   :  { %v1236_v41 = vadd.f32 %v1235_v38, %v453_v37  ;;  %v482_v38 = vld [vmem:[%s3778_s0 + $0xec8] sm:$0xff] }
 0x37a   :  { %v1237_v43 = vadd.f32 %v1236_v41, %v454_v39  ;;  %v484_v39 = vld [vmem:[%s3778_s0 + $0xed8] sm:$0xff]  ;;  %v483_v41 = vld [vmem:[%s3778_s0 + $0xed0] sm:$0xff] }
 0x37c   :  { %v1238_v45 = vadd.f32 %v1237_v43, %v455_v42  ;;  %v1274_v43 = vsel %vm683_vm0, %v484_v39, 0.0 }
 0x37e   :  { %v1240_v47 = vadd.f32 %v1239_v44, %v1238_v45  ;;  %v485_v45 = vld [vmem:[%s3778_s0 + $0xee0] sm:$0xff] }
 0x380   :  { %v1241_v50 = vadd.f32 %v1240_v47, %v457_v46  ;;  %v486_v47 = vld [vmem:[%s3778_s0 + $0xee8] sm:$0xff] }
 0x382   :  { %v1242_v52 = vadd.f32 %v1241_v50, %v458_v48  ;;  %v488_v48 = vld [vmem:[%s3778_s0 + $0xef8] sm:$0xff]  ;;  %v487_v50 = vld [vmem:[%s3778_s0 + $0xef0] sm:$0xff] }
 0x384   :  { %v1243_v54 = vadd.f32 %v1242_v52, %v459_v51  ;;  %v1279_v52 = vsel %vm683_vm0, %v488_v48, 0.0 }
 0x386   :  { %v1245_v56 = vadd.f32 %v1244_v53, %v1243_v54  ;;  %v489_v54 = vld [vmem:[%s3778_s0 + $0xf00] sm:$0xff] }
 0x388   :  { %v1246_v59 = vadd.f32 %v1245_v56, %v461_v55  ;;  %v490_v56 = vld [vmem:[%s3778_s0 + $0xf08] sm:$0xff] }
 0x38a   :  { %v1247_v61 = vadd.f32 %v1246_v59, %v462_v57  ;;  %v492_v57 = vld [vmem:[%s3778_s0 + $0xf18] sm:$0xff]  ;;  %v491_v59 = vld [vmem:[%s3778_s0 + $0xf10] sm:$0xff] }
 0x38c   :  { %v1248_v63 = vadd.f32 %v1247_v61, %v463_v60  ;;  %v1284_v61 = vsel %vm683_vm0, %v492_v57, 0.0 }
 0x38e   :  { %v1250_v1 = vadd.f32 %v1249_v62, %v1248_v63  ;;  %v493_v63 = vld [vmem:[%s3778_s0 + $0xf20] sm:$0xff] }
 0x390   :  { %v1251_v4 = vadd.f32 %v1250_v1, %v465_v0  ;;  %v494_v1 = vld [vmem:[%s3778_s0 + $0xf28] sm:$0xff] }
 0x392   :  { %v1252_v6 = vadd.f32 %v1251_v4, %v466_v2  ;;  %v496_v2 = vld [vmem:[%s3778_s0 + $0xf38] sm:$0xff]  ;;  %v495_v4 = vld [vmem:[%s3778_s0 + $0xf30] sm:$0xff] }
 0x394   :  { %v1253_v8 = vadd.f32 %v1252_v6, %v467_v5  ;;  %v1289_v6 = vsel %vm683_vm0, %v496_v2, 0.0 }
 0x396   :  { %v1255_v10 = vadd.f32 %v1254_v7, %v1253_v8  ;;  %v497_v8 = vld [vmem:[%s3778_s0 + $0xf40] sm:$0xff] }
 0x398   :  { %v1256_v13 = vadd.f32 %v1255_v10, %v469_v9  ;;  %v498_v10 = vld [vmem:[%s3778_s0 + $0xf48] sm:$0xff] }
 0x39a   :  { %v1257_v15 = vadd.f32 %v1256_v13, %v470_v11  ;;  %v500_v11 = vld [vmem:[%s3778_s0 + $0xf58] sm:$0xff]  ;;  %v499_v13 = vld [vmem:[%s3778_s0 + $0xf50] sm:$0xff] }
 0x39c   :  { %v1258_v17 = vadd.f32 %v1257_v15, %v471_v14  ;;  %v1294_v15 = vsel %vm683_vm0, %v500_v11, 0.0 }
 0x39e   :  { %v1260_v19 = vadd.f32 %v1259_v16, %v1258_v17  ;;  %v501_v17 = vld [vmem:[%s3778_s0 + $0xf60] sm:$0xff] }
 0x3a0   :  { %v1261_v22 = vadd.f32 %v1260_v19, %v473_v18  ;;  %v502_v19 = vld [vmem:[%s3778_s0 + $0xf68] sm:$0xff] }
 0x3a2   :  { %v1262_v24 = vadd.f32 %v1261_v22, %v474_v20  ;;  %v504_v20 = vld [vmem:[%s3778_s0 + $0xf78] sm:$0xff]  ;;  %v503_v22 = vld [vmem:[%s3778_s0 + $0xf70] sm:$0xff] }
 0x3a4   :  { %v1263_v26 = vadd.f32 %v1262_v24, %v475_v23  ;;  %v1299_v24 = vsel %vm683_vm0, %v504_v20, 0.0 }
 0x3a6   :  { %v1265_v28 = vadd.f32 %v1264_v25, %v1263_v26  ;;  %v505_v26 = vld [vmem:[%s3778_s0 + $0xf80] sm:$0xff] }
 0x3a8   :  { %v1266_v31 = vadd.f32 %v1265_v28, %v477_v27  ;;  %v506_v28 = vld [vmem:[%s3778_s0 + $0xf88] sm:$0xff] }
 0x3aa   :  { %v1267_v33 = vadd.f32 %v1266_v31, %v478_v29  ;;  %v508_v29 = vld [vmem:[%s3778_s0 + $0xf98] sm:$0xff]  ;;  %v507_v31 = vld [vmem:[%s3778_s0 + $0xf90] sm:$0xff] }
 0x3ac   :  { %v1268_v35 = vadd.f32 %v1267_v33, %v479_v32  ;;  %v1304_v33 = vsel %vm683_vm0, %v508_v29, 0.0 }
 0x3ae   :  { %v1270_v37 = vadd.f32 %v1269_v34, %v1268_v35  ;;  %v509_v35 = vld [vmem:[%s3778_s0 + $0xfa0] sm:$0xff] }
 0x3b0   :  { %v1271_v40 = vadd.f32 %v1270_v37, %v481_v36  ;;  %v510_v37 = vld [vmem:[%s3778_s0 + $0xfa8] sm:$0xff] }
 0x3b2   :  { %v1272_v42 = vadd.f32 %v1271_v40, %v482_v38  ;;  %v512_v38 = vld [vmem:[%s3778_s0 + $0xfb8] sm:$0xff]  ;;  %v511_v40 = vld [vmem:[%s3778_s0 + $0xfb0] sm:$0xff] }
 0x3b4   :  { %v1273_v44 = vadd.f32 %v1272_v42, %v483_v41  ;;  %v1309_v42 = vsel %vm683_vm0, %v512_v38, 0.0 }
 0x3b6   :  { %v1275_v46 = vadd.f32 %v1274_v43, %v1273_v44  ;;  %v513_v44 = vld [vmem:[%s3778_s0 + $0xfc0] sm:$0xff] }
 0x3b8   :  { %v1276_v49 = vadd.f32 %v1275_v46, %v485_v45  ;;  %v514_v46 = vld [vmem:[%s3778_s0 + $0xfc8] sm:$0xff] }
 0x3ba   :  { %v1277_v51 = vadd.f32 %v1276_v49, %v486_v47  ;;  %v516_v47 = vld [vmem:[%s3778_s0 + $0xfd8] sm:$0xff]  ;;  %v515_v49 = vld [vmem:[%s3778_s0 + $0xfd0] sm:$0xff] }
 0x3bc   :  { %v1278_v53 = vadd.f32 %v1277_v51, %v487_v50  ;;  %v1314_v51 = vsel %vm683_vm0, %v516_v47, 0.0 }
 0x3be   :  { %v1280_v55 = vadd.f32 %v1279_v52, %v1278_v53  ;;  %v517_v53 = vld [vmem:[%s3778_s0 + $0xfe0] sm:$0xff] }
 0x3c0   :  { %v1281_v58 = vadd.f32 %v1280_v55, %v489_v54  ;;  %v518_v55 = vld [vmem:[%s3778_s0 + $0xfe8] sm:$0xff] }
 0x3c2   :  { %v1282_v60 = vadd.f32 %v1281_v58, %v490_v56  ;;  %v520_v56 = vld [vmem:[%s3778_s0 + $0xff8] sm:$0xff]  ;;  %v519_v58 = vld [vmem:[%s3778_s0 + $0xff0] sm:$0xff] }
 0x3c4   :  { %v1283_v62 = vadd.f32 %v1282_v60, %v491_v59  ;;  %v1319_v60 = vsel %vm683_vm0, %v520_v56, 0.0 }
 0x3c6   :  { %v1285_v0 = vadd.f32 %v1284_v61, %v1283_v62  ;;  %v521_v62 = vld [vmem:[%s3778_s0 + $0x1000] sm:$0xff] }
 0x3c8   :  { %v1286_v3 = vadd.f32 %v1285_v0, %v493_v63  ;;  %v522_v0 = vld [vmem:[%s3778_s0 + $0x1008] sm:$0xff] }
 0x3ca   :  { %v1287_v5 = vadd.f32 %v1286_v3, %v494_v1  ;;  %v524_v1 = vld [vmem:[%s3778_s0 + $0x1018] sm:$0xff]  ;;  %v523_v3 = vld [vmem:[%s3778_s0 + $0x1010] sm:$0xff] }
 0x3cc   :  { %v1288_v7 = vadd.f32 %v1287_v5, %v495_v4  ;;  %v1324_v5 = vsel %vm683_vm0, %v524_v1, 0.0 }
 0x3ce   :  { %v1290_v9 = vadd.f32 %v1289_v6, %v1288_v7  ;;  %v525_v7 = vld [vmem:[%s3778_s0 + $0x1020] sm:$0xff] }
 0x3d0   :  { %v1291_v12 = vadd.f32 %v1290_v9, %v497_v8  ;;  %v526_v9 = vld [vmem:[%s3778_s0 + $0x1028] sm:$0xff] }
 0x3d2   :  { %v1292_v14 = vadd.f32 %v1291_v12, %v498_v10  ;;  %v528_v10 = vld [vmem:[%s3778_s0 + $0x1038] sm:$0xff]  ;;  %v527_v12 = vld [vmem:[%s3778_s0 + $0x1030] sm:$0xff] }
 0x3d4   :  { %v1293_v16 = vadd.f32 %v1292_v14, %v499_v13  ;;  %v1329_v14 = vsel %vm683_vm0, %v528_v10, 0.0 }
 0x3d6   :  { %v1295_v18 = vadd.f32 %v1294_v15, %v1293_v16  ;;  %v529_v16 = vld [vmem:[%s3778_s0 + $0x1040] sm:$0xff] }
 0x3d8   :  { %v1296_v21 = vadd.f32 %v1295_v18, %v501_v17  ;;  %v530_v18 = vld [vmem:[%s3778_s0 + $0x1048] sm:$0xff] }
 0x3da   :  { %v1297_v23 = vadd.f32 %v1296_v21, %v502_v19  ;;  %v532_v19 = vld [vmem:[%s3778_s0 + $0x1058] sm:$0xff]  ;;  %v531_v21 = vld [vmem:[%s3778_s0 + $0x1050] sm:$0xff] }
 0x3dc   :  { %v1298_v25 = vadd.f32 %v1297_v23, %v503_v22  ;;  %v1334_v23 = vsel %vm683_vm0, %v532_v19, 0.0 }
 0x3de   :  { %v1300_v27 = vadd.f32 %v1299_v24, %v1298_v25  ;;  %v533_v25 = vld [vmem:[%s3778_s0 + $0x1060] sm:$0xff] }
 0x3e0   :  { %v1301_v30 = vadd.f32 %v1300_v27, %v505_v26  ;;  %v534_v27 = vld [vmem:[%s3778_s0 + $0x1068] sm:$0xff] }
 0x3e2   :  { %v1302_v32 = vadd.f32 %v1301_v30, %v506_v28  ;;  %v536_v28 = vld [vmem:[%s3778_s0 + $0x1078] sm:$0xff]  ;;  %v535_v30 = vld [vmem:[%s3778_s0 + $0x1070] sm:$0xff] }
 0x3e4   :  { %v1303_v34 = vadd.f32 %v1302_v32, %v507_v31  ;;  %v1339_v32 = vsel %vm683_vm0, %v536_v28, 0.0 }
 0x3e6   :  { %v1305_v36 = vadd.f32 %v1304_v33, %v1303_v34  ;;  %v537_v34 = vld [vmem:[%s3778_s0 + $0x1080] sm:$0xff] }
 0x3e8   :  { %v1306_v39 = vadd.f32 %v1305_v36, %v509_v35  ;;  %v538_v36 = vld [vmem:[%s3778_s0 + $0x1088] sm:$0xff] }
 0x3ea   :  { %v1307_v41 = vadd.f32 %v1306_v39, %v510_v37  ;;  %v540_v37 = vld [vmem:[%s3778_s0 + $0x1098] sm:$0xff]  ;;  %v539_v39 = vld [vmem:[%s3778_s0 + $0x1090] sm:$0xff] }
 0x3ec   :  { %v1308_v43 = vadd.f32 %v1307_v41, %v511_v40  ;;  %v1344_v41 = vsel %vm683_vm0, %v540_v37, 0.0 }
 0x3ee   :  { %v1310_v45 = vadd.f32 %v1309_v42, %v1308_v43  ;;  %v541_v43 = vld [vmem:[%s3778_s0 + $0x10a0] sm:$0xff] }
 0x3f0   :  { %v1311_v48 = vadd.f32 %v1310_v45, %v513_v44  ;;  %v542_v45 = vld [vmem:[%s3778_s0 + $0x10a8] sm:$0xff] }
 0x3f2   :  { %v1312_v50 = vadd.f32 %v1311_v48, %v514_v46  ;;  %v544_v46 = vld [vmem:[%s3778_s0 + $0x10b8] sm:$0xff]  ;;  %v543_v48 = vld [vmem:[%s3778_s0 + $0x10b0] sm:$0xff] }
 0x3f4   :  { %v1313_v52 = vadd.f32 %v1312_v50, %v515_v49  ;;  %v1349_v50 = vsel %vm683_vm0, %v544_v46, 0.0 }
 0x3f6   :  { %v1315_v54 = vadd.f32 %v1314_v51, %v1313_v52  ;;  %v545_v52 = vld [vmem:[%s3778_s0 + $0x10c0] sm:$0xff] }
 0x3f8   :  { %v1316_v57 = vadd.f32 %v1315_v54, %v517_v53  ;;  %v546_v54 = vld [vmem:[%s3778_s0 + $0x10c8] sm:$0xff] }
 0x3fa   :  { %v1317_v59 = vadd.f32 %v1316_v57, %v518_v55  ;;  %v548_v55 = vld [vmem:[%s3778_s0 + $0x10d8] sm:$0xff]  ;;  %v547_v57 = vld [vmem:[%s3778_s0 + $0x10d0] sm:$0xff] }
 0x3fc   :  { %v1318_v61 = vadd.f32 %v1317_v59, %v519_v58  ;;  %v1354_v59 = vsel %vm683_vm0, %v548_v55, 0.0 }
 0x3fe   :  { %v1320_v63 = vadd.f32 %v1319_v60, %v1318_v61  ;;  %v549_v61 = vld [vmem:[%s3778_s0 + $0x10e0] sm:$0xff] }
 0x400   :  { %v1321_v2 = vadd.f32 %v1320_v63, %v521_v62  ;;  %v550_v63 = vld [vmem:[%s3778_s0 + $0x10e8] sm:$0xff] }
 0x402   :  { %v1322_v4 = vadd.f32 %v1321_v2, %v522_v0  ;;  %v552_v0 = vld [vmem:[%s3778_s0 + $0x10f8] sm:$0xff]  ;;  %v551_v2 = vld [vmem:[%s3778_s0 + $0x10f0] sm:$0xff] }
 0x404   :  { %v1323_v6 = vadd.f32 %v1322_v4, %v523_v3  ;;  %v1359_v4 = vsel %vm683_vm0, %v552_v0, 0.0 }
 0x406   :  { %v1325_v8 = vadd.f32 %v1324_v5, %v1323_v6  ;;  %v553_v6 = vld [vmem:[%s3778_s0 + $0x1100] sm:$0xff] }
 0x408   :  { %v1326_v11 = vadd.f32 %v1325_v8, %v525_v7  ;;  %v554_v8 = vld [vmem:[%s3778_s0 + $0x1108] sm:$0xff] }
 0x40a   :  { %v1327_v13 = vadd.f32 %v1326_v11, %v526_v9  ;;  %v556_v9 = vld [vmem:[%s3778_s0 + $0x1118] sm:$0xff]  ;;  %v555_v11 = vld [vmem:[%s3778_s0 + $0x1110] sm:$0xff] }
 0x40c   :  { %v1328_v15 = vadd.f32 %v1327_v13, %v527_v12  ;;  %v1364_v13 = vsel %vm683_vm0, %v556_v9, 0.0 }
 0x40e   :  { %v1330_v17 = vadd.f32 %v1329_v14, %v1328_v15  ;;  %v557_v15 = vld [vmem:[%s3778_s0 + $0x1120] sm:$0xff] }
 0x410   :  { %v1331_v20 = vadd.f32 %v1330_v17, %v529_v16  ;;  %v558_v17 = vld [vmem:[%s3778_s0 + $0x1128] sm:$0xff] }
 0x412   :  { %v1332_v22 = vadd.f32 %v1331_v20, %v530_v18  ;;  %v560_v18 = vld [vmem:[%s3778_s0 + $0x1138] sm:$0xff]  ;;  %v559_v20 = vld [vmem:[%s3778_s0 + $0x1130] sm:$0xff] }
 0x414   :  { %v1333_v24 = vadd.f32 %v1332_v22, %v531_v21  ;;  %v1369_v22 = vsel %vm683_vm0, %v560_v18, 0.0 }
 0x416   :  { %v1335_v26 = vadd.f32 %v1334_v23, %v1333_v24  ;;  %v561_v24 = vld [vmem:[%s3778_s0 + $0x1140] sm:$0xff] }
 0x418   :  { %v1336_v29 = vadd.f32 %v1335_v26, %v533_v25  ;;  %v562_v26 = vld [vmem:[%s3778_s0 + $0x1148] sm:$0xff] }
 0x41a   :  { %v1337_v31 = vadd.f32 %v1336_v29, %v534_v27  ;;  %v564_v27 = vld [vmem:[%s3778_s0 + $0x1158] sm:$0xff]  ;;  %v563_v29 = vld [vmem:[%s3778_s0 + $0x1150] sm:$0xff] }
 0x41c   :  { %v1338_v33 = vadd.f32 %v1337_v31, %v535_v30  ;;  %v1374_v31 = vsel %vm683_vm0, %v564_v27, 0.0 }
 0x41e   :  { %v1340_v35 = vadd.f32 %v1339_v32, %v1338_v33  ;;  %v565_v33 = vld [vmem:[%s3778_s0 + $0x1160] sm:$0xff] }
 0x420   :  { %v1341_v38 = vadd.f32 %v1340_v35, %v537_v34  ;;  %v566_v35 = vld [vmem:[%s3778_s0 + $0x1168] sm:$0xff] }
 0x422   :  { %v1342_v40 = vadd.f32 %v1341_v38, %v538_v36  ;;  %v568_v36 = vld [vmem:[%s3778_s0 + $0x1178] sm:$0xff]  ;;  %v567_v38 = vld [vmem:[%s3778_s0 + $0x1170] sm:$0xff] }
 0x424   :  { %v1343_v42 = vadd.f32 %v1342_v40, %v539_v39  ;;  %v1379_v40 = vsel %vm683_vm0, %v568_v36, 0.0 }
 0x426   :  { %v1345_v44 = vadd.f32 %v1344_v41, %v1343_v42  ;;  %v569_v42 = vld [vmem:[%s3778_s0 + $0x1180] sm:$0xff] }
 0x428   :  { %v1346_v47 = vadd.f32 %v1345_v44, %v541_v43  ;;  %v570_v44 = vld [vmem:[%s3778_s0 + $0x1188] sm:$0xff] }
 0x42a   :  { %v1347_v49 = vadd.f32 %v1346_v47, %v542_v45  ;;  %v572_v45 = vld [vmem:[%s3778_s0 + $0x1198] sm:$0xff]  ;;  %v571_v47 = vld [vmem:[%s3778_s0 + $0x1190] sm:$0xff] }
 0x42c   :  { %v1348_v51 = vadd.f32 %v1347_v49, %v543_v48  ;;  %v1384_v49 = vsel %vm683_vm0, %v572_v45, 0.0 }
 0x42e   :  { %v1350_v53 = vadd.f32 %v1349_v50, %v1348_v51  ;;  %v573_v51 = vld [vmem:[%s3778_s0 + $0x11a0] sm:$0xff] }
 0x430   :  { %v1351_v56 = vadd.f32 %v1350_v53, %v545_v52  ;;  %v574_v53 = vld [vmem:[%s3778_s0 + $0x11a8] sm:$0xff] }
 0x432   :  { %v1352_v58 = vadd.f32 %v1351_v56, %v546_v54  ;;  %v576_v54 = vld [vmem:[%s3778_s0 + $0x11b8] sm:$0xff]  ;;  %v575_v56 = vld [vmem:[%s3778_s0 + $0x11b0] sm:$0xff] }
 0x434   :  { %v1353_v60 = vadd.f32 %v1352_v58, %v547_v57  ;;  %v1389_v58 = vsel %vm683_vm0, %v576_v54, 0.0 }
 0x436   :  { %v1355_v62 = vadd.f32 %v1354_v59, %v1353_v60  ;;  %v577_v60 = vld [vmem:[%s3778_s0 + $0x11c0] sm:$0xff] }
 0x438   :  { %v1356_v1 = vadd.f32 %v1355_v62, %v549_v61  ;;  %v578_v62 = vld [vmem:[%s3778_s0 + $0x11c8] sm:$0xff] }
 0x43a   :  { %v1357_v3 = vadd.f32 %v1356_v1, %v550_v63  ;;  %v580_v63 = vld [vmem:[%s3778_s0 + $0x11d8] sm:$0xff]  ;;  %v579_v1 = vld [vmem:[%s3778_s0 + $0x11d0] sm:$0xff] }
 0x43c   :  { %v1358_v5 = vadd.f32 %v1357_v3, %v551_v2  ;;  %v1394_v3 = vsel %vm683_vm0, %v580_v63, 0.0 }
 0x43e   :  { %v1360_v7 = vadd.f32 %v1359_v4, %v1358_v5  ;;  %v581_v5 = vld [vmem:[%s3778_s0 + $0x11e0] sm:$0xff] }
 0x440   :  { %v1361_v10 = vadd.f32 %v1360_v7, %v553_v6  ;;  %v582_v7 = vld [vmem:[%s3778_s0 + $0x11e8] sm:$0xff] }
 0x442   :  { %v1362_v12 = vadd.f32 %v1361_v10, %v554_v8  ;;  %v584_v8 = vld [vmem:[%s3778_s0 + $0x11f8] sm:$0xff]  ;;  %v583_v10 = vld [vmem:[%s3778_s0 + $0x11f0] sm:$0xff] }
 0x444   :  { %v1363_v14 = vadd.f32 %v1362_v12, %v555_v11  ;;  %v1399_v12 = vsel %vm683_vm0, %v584_v8, 0.0 }
 0x446   :  { %v1365_v16 = vadd.f32 %v1364_v13, %v1363_v14  ;;  %v585_v14 = vld [vmem:[%s3778_s0 + $0x1200] sm:$0xff] }
 0x448   :  { %v1366_v19 = vadd.f32 %v1365_v16, %v557_v15  ;;  %v586_v16 = vld [vmem:[%s3778_s0 + $0x1208] sm:$0xff] }
 0x44a   :  { %v1367_v21 = vadd.f32 %v1366_v19, %v558_v17  ;;  %v588_v17 = vld [vmem:[%s3778_s0 + $0x1218] sm:$0xff]  ;;  %v587_v19 = vld [vmem:[%s3778_s0 + $0x1210] sm:$0xff] }
 0x44c   :  { %v1368_v23 = vadd.f32 %v1367_v21, %v559_v20  ;;  %v1404_v21 = vsel %vm683_vm0, %v588_v17, 0.0 }
 0x44e   :  { %v1370_v25 = vadd.f32 %v1369_v22, %v1368_v23  ;;  %v589_v23 = vld [vmem:[%s3778_s0 + $0x1220] sm:$0xff] }
 0x450   :  { %v1371_v28 = vadd.f32 %v1370_v25, %v561_v24  ;;  %v590_v25 = vld [vmem:[%s3778_s0 + $0x1228] sm:$0xff] }
 0x452   :  { %v1372_v30 = vadd.f32 %v1371_v28, %v562_v26  ;;  %v592_v26 = vld [vmem:[%s3778_s0 + $0x1238] sm:$0xff]  ;;  %v591_v28 = vld [vmem:[%s3778_s0 + $0x1230] sm:$0xff] }
 0x454   :  { %v1373_v32 = vadd.f32 %v1372_v30, %v563_v29  ;;  %v1409_v30 = vsel %vm683_vm0, %v592_v26, 0.0 }
 0x456   :  { %v1375_v34 = vadd.f32 %v1374_v31, %v1373_v32  ;;  %v593_v32 = vld [vmem:[%s3778_s0 + $0x1240] sm:$0xff] }
 0x458   :  { %v1376_v37 = vadd.f32 %v1375_v34, %v565_v33  ;;  %v594_v34 = vld [vmem:[%s3778_s0 + $0x1248] sm:$0xff] }
 0x45a   :  { %v1377_v39 = vadd.f32 %v1376_v37, %v566_v35  ;;  %v596_v35 = vld [vmem:[%s3778_s0 + $0x1258] sm:$0xff]  ;;  %v595_v37 = vld [vmem:[%s3778_s0 + $0x1250] sm:$0xff] }
 0x45c   :  { %v1378_v41 = vadd.f32 %v1377_v39, %v567_v38  ;;  %v1414_v39 = vsel %vm683_vm0, %v596_v35, 0.0 }
 0x45e   :  { %v1380_v43 = vadd.f32 %v1379_v40, %v1378_v41  ;;  %v597_v41 = vld [vmem:[%s3778_s0 + $0x1260] sm:$0xff] }
 0x460   :  { %v1381_v46 = vadd.f32 %v1380_v43, %v569_v42  ;;  %v598_v43 = vld [vmem:[%s3778_s0 + $0x1268] sm:$0xff] }
 0x462   :  { %v1382_v48 = vadd.f32 %v1381_v46, %v570_v44  ;;  %v600_v44 = vld [vmem:[%s3778_s0 + $0x1278] sm:$0xff]  ;;  %v599_v46 = vld [vmem:[%s3778_s0 + $0x1270] sm:$0xff] }
 0x464   :  { %v1383_v50 = vadd.f32 %v1382_v48, %v571_v47  ;;  %v1419_v48 = vsel %vm683_vm0, %v600_v44, 0.0 }
 0x466   :  { %v1385_v52 = vadd.f32 %v1384_v49, %v1383_v50  ;;  %v601_v50 = vld [vmem:[%s3778_s0 + $0x1280] sm:$0xff] }
 0x468   :  { %v1386_v55 = vadd.f32 %v1385_v52, %v573_v51  ;;  %v602_v52 = vld [vmem:[%s3778_s0 + $0x1288] sm:$0xff] }
 0x46a   :  { %v1387_v57 = vadd.f32 %v1386_v55, %v574_v53  ;;  %v604_v53 = vld [vmem:[%s3778_s0 + $0x1298] sm:$0xff]  ;;  %v603_v55 = vld [vmem:[%s3778_s0 + $0x1290] sm:$0xff] }
 0x46c   :  { %v1388_v59 = vadd.f32 %v1387_v57, %v575_v56  ;;  %v1424_v57 = vsel %vm683_vm0, %v604_v53, 0.0 }
 0x46e   :  { %v1390_v61 = vadd.f32 %v1389_v58, %v1388_v59  ;;  %v605_v59 = vld [vmem:[%s3778_s0 + $0x12a0] sm:$0xff] }
 0x470   :  { %v1391_v0 = vadd.f32 %v1390_v61, %v577_v60  ;;  %v606_v61 = vld [vmem:[%s3778_s0 + $0x12a8] sm:$0xff] }
 0x472   :  { %v1392_v2 = vadd.f32 %v1391_v0, %v578_v62  ;;  %v608_v62 = vld [vmem:[%s3778_s0 + $0x12b8] sm:$0xff]  ;;  %v607_v0 = vld [vmem:[%s3778_s0 + $0x12b0] sm:$0xff] }
 0x474   :  { %v1393_v4 = vadd.f32 %v1392_v2, %v579_v1  ;;  %v1429_v2 = vsel %vm683_vm0, %v608_v62, 0.0 }
 0x476   :  { %v1395_v6 = vadd.f32 %v1394_v3, %v1393_v4  ;;  %v609_v4 = vld [vmem:[%s3778_s0 + $0x12c0] sm:$0xff] }
 0x478   :  { %v1396_v9 = vadd.f32 %v1395_v6, %v581_v5  ;;  %v610_v6 = vld [vmem:[%s3778_s0 + $0x12c8] sm:$0xff] }
 0x47a   :  { %v1397_v11 = vadd.f32 %v1396_v9, %v582_v7  ;;  %v612_v7 = vld [vmem:[%s3778_s0 + $0x12d8] sm:$0xff]  ;;  %v611_v9 = vld [vmem:[%s3778_s0 + $0x12d0] sm:$0xff] }
 0x47c   :  { %v1398_v13 = vadd.f32 %v1397_v11, %v583_v10  ;;  %v1434_v11 = vsel %vm683_vm0, %v612_v7, 0.0 }
 0x47e   :  { %v1400_v15 = vadd.f32 %v1399_v12, %v1398_v13  ;;  %v613_v13 = vld [vmem:[%s3778_s0 + $0x12e0] sm:$0xff] }
 0x480   :  { %v1401_v18 = vadd.f32 %v1400_v15, %v585_v14  ;;  %v614_v15 = vld [vmem:[%s3778_s0 + $0x12e8] sm:$0xff] }
 0x482   :  { %v1402_v20 = vadd.f32 %v1401_v18, %v586_v16  ;;  %v616_v16 = vld [vmem:[%s3778_s0 + $0x12f8] sm:$0xff]  ;;  %v615_v18 = vld [vmem:[%s3778_s0 + $0x12f0] sm:$0xff] }
 0x484   :  { %v1403_v22 = vadd.f32 %v1402_v20, %v587_v19  ;;  %v1439_v20 = vsel %vm683_vm0, %v616_v16, 0.0 }
 0x486   :  { %v1405_v24 = vadd.f32 %v1404_v21, %v1403_v22  ;;  %v617_v22 = vld [vmem:[%s3778_s0 + $0x1300] sm:$0xff] }
 0x488   :  { %v1406_v27 = vadd.f32 %v1405_v24, %v589_v23  ;;  %v618_v24 = vld [vmem:[%s3778_s0 + $0x1308] sm:$0xff] }
 0x48a   :  { %v1407_v29 = vadd.f32 %v1406_v27, %v590_v25  ;;  %v620_v25 = vld [vmem:[%s3778_s0 + $0x1318] sm:$0xff]  ;;  %v619_v27 = vld [vmem:[%s3778_s0 + $0x1310] sm:$0xff] }
 0x48c   :  { %v1408_v31 = vadd.f32 %v1407_v29, %v591_v28  ;;  %v1444_v29 = vsel %vm683_vm0, %v620_v25, 0.0 }
 0x48e   :  { %v1410_v33 = vadd.f32 %v1409_v30, %v1408_v31  ;;  %v621_v31 = vld [vmem:[%s3778_s0 + $0x1320] sm:$0xff] }
 0x490   :  { %v1411_v36 = vadd.f32 %v1410_v33, %v593_v32  ;;  %v622_v33 = vld [vmem:[%s3778_s0 + $0x1328] sm:$0xff] }
 0x492   :  { %v1412_v38 = vadd.f32 %v1411_v36, %v594_v34  ;;  %v624_v34 = vld [vmem:[%s3778_s0 + $0x1338] sm:$0xff]  ;;  %v623_v36 = vld [vmem:[%s3778_s0 + $0x1330] sm:$0xff] }
 0x494   :  { %v1413_v40 = vadd.f32 %v1412_v38, %v595_v37  ;;  %v1449_v38 = vsel %vm683_vm0, %v624_v34, 0.0 }
 0x496   :  { %v1415_v42 = vadd.f32 %v1414_v39, %v1413_v40  ;;  %v625_v40 = vld [vmem:[%s3778_s0 + $0x1340] sm:$0xff] }
 0x498   :  { %v1416_v45 = vadd.f32 %v1415_v42, %v597_v41  ;;  %v626_v42 = vld [vmem:[%s3778_s0 + $0x1348] sm:$0xff] }
 0x49a   :  { %v1417_v47 = vadd.f32 %v1416_v45, %v598_v43  ;;  %v628_v43 = vld [vmem:[%s3778_s0 + $0x1358] sm:$0xff]  ;;  %v627_v45 = vld [vmem:[%s3778_s0 + $0x1350] sm:$0xff] }
 0x49c   :  { %v1418_v49 = vadd.f32 %v1417_v47, %v599_v46  ;;  %v1454_v47 = vsel %vm683_vm0, %v628_v43, 0.0 }
 0x49e   :  { %v1420_v51 = vadd.f32 %v1419_v48, %v1418_v49  ;;  %v629_v49 = vld [vmem:[%s3778_s0 + $0x1360] sm:$0xff] }
 0x4a0   :  { %v1421_v54 = vadd.f32 %v1420_v51, %v601_v50  ;;  %v630_v51 = vld [vmem:[%s3778_s0 + $0x1368] sm:$0xff] }
 0x4a2   :  { %v1422_v56 = vadd.f32 %v1421_v54, %v602_v52  ;;  %v632_v52 = vld [vmem:[%s3778_s0 + $0x1378] sm:$0xff]  ;;  %v631_v54 = vld [vmem:[%s3778_s0 + $0x1370] sm:$0xff] }
 0x4a4   :  { %v1423_v58 = vadd.f32 %v1422_v56, %v603_v55  ;;  %v1459_v56 = vsel %vm683_vm0, %v632_v52, 0.0 }
 0x4a6   :  { %v1425_v60 = vadd.f32 %v1424_v57, %v1423_v58  ;;  %v633_v58 = vld [vmem:[%s3778_s0 + $0x1380] sm:$0xff] }
 0x4a8   :  { %v1426_v63 = vadd.f32 %v1425_v60, %v605_v59  ;;  %v634_v60 = vld [vmem:[%s3778_s0 + $0x1388] sm:$0xff] }
 0x4aa   :  { %v1427_v1 = vadd.f32 %v1426_v63, %v606_v61  ;;  %v636_v61 = vld [vmem:[%s3778_s0 + $0x1398] sm:$0xff]  ;;  %v635_v63 = vld [vmem:[%s3778_s0 + $0x1390] sm:$0xff] }
 0x4ac   :  { %v1428_v3 = vadd.f32 %v1427_v1, %v607_v0  ;;  %v1464_v1 = vsel %vm683_vm0, %v636_v61, 0.0 }
 0x4ae   :  { %v1430_v5 = vadd.f32 %v1429_v2, %v1428_v3  ;;  %v637_v3 = vld [vmem:[%s3778_s0 + $0x13a0] sm:$0xff] }
 0x4b0   :  { %v1431_v8 = vadd.f32 %v1430_v5, %v609_v4  ;;  %v638_v5 = vld [vmem:[%s3778_s0 + $0x13a8] sm:$0xff] }
 0x4b2   :  { %v1432_v10 = vadd.f32 %v1431_v8, %v610_v6  ;;  %v640_v6 = vld [vmem:[%s3778_s0 + $0x13b8] sm:$0xff]  ;;  %v639_v8 = vld [vmem:[%s3778_s0 + $0x13b0] sm:$0xff] }
 0x4b4   :  { %v1433_v12 = vadd.f32 %v1432_v10, %v611_v9  ;;  %v1469_v10 = vsel %vm683_vm0, %v640_v6, 0.0 }
 0x4b6   :  { %v1435_v14 = vadd.f32 %v1434_v11, %v1433_v12  ;;  %v641_v12 = vld [vmem:[%s3778_s0 + $0x13c0] sm:$0xff] }
 0x4b8   :  { %v1436_v17 = vadd.f32 %v1435_v14, %v613_v13  ;;  %v642_v14 = vld [vmem:[%s3778_s0 + $0x13c8] sm:$0xff] }
 0x4ba   :  { %v1437_v19 = vadd.f32 %v1436_v17, %v614_v15  ;;  %v644_v15 = vld [vmem:[%s3778_s0 + $0x13d8] sm:$0xff]  ;;  %v643_v17 = vld [vmem:[%s3778_s0 + $0x13d0] sm:$0xff] }
 0x4bc   :  { %v1438_v21 = vadd.f32 %v1437_v19, %v615_v18  ;;  %v1474_v19 = vsel %vm683_vm0, %v644_v15, 0.0 }
 0x4be   :  { %v1440_v23 = vadd.f32 %v1439_v20, %v1438_v21  ;;  %v645_v21 = vld [vmem:[%s3778_s0 + $0x13e0] sm:$0xff] }
 0x4c0   :  { %v1441_v26 = vadd.f32 %v1440_v23, %v617_v22  ;;  %v646_v23 = vld [vmem:[%s3778_s0 + $0x13e8] sm:$0xff] }
 0x4c2   :  { %v1442_v28 = vadd.f32 %v1441_v26, %v618_v24  ;;  %v648_v24 = vld [vmem:[%s3778_s0 + $0x13f8] sm:$0xff]  ;;  %v647_v26 = vld [vmem:[%s3778_s0 + $0x13f0] sm:$0xff] }
 0x4c4   :  { %v1443_v30 = vadd.f32 %v1442_v28, %v619_v27  ;;  %v1479_v28 = vsel %vm683_vm0, %v648_v24, 0.0 }
 0x4c6   :  { %v1445_v32 = vadd.f32 %v1444_v29, %v1443_v30  ;;  %v649_v30 = vld [vmem:[%s3778_s0 + $0x1400] sm:$0xff] }
 0x4c8   :  { %v1446_v35 = vadd.f32 %v1445_v32, %v621_v31  ;;  %v650_v32 = vld [vmem:[%s3778_s0 + $0x1408] sm:$0xff] }
 0x4ca   :  { %v1447_v37 = vadd.f32 %v1446_v35, %v622_v33  ;;  %v652_v33 = vld [vmem:[%s3778_s0 + $0x1418] sm:$0xff]  ;;  %v651_v35 = vld [vmem:[%s3778_s0 + $0x1410] sm:$0xff] }
 0x4cc   :  { %v1448_v39 = vadd.f32 %v1447_v37, %v623_v36  ;;  %v1484_v37 = vsel %vm683_vm0, %v652_v33, 0.0 }
 0x4ce   :  { %v1450_v41 = vadd.f32 %v1449_v38, %v1448_v39  ;;  %v653_v39 = vld [vmem:[%s3778_s0 + $0x1420] sm:$0xff] }
 0x4d0   :  { %v1451_v44 = vadd.f32 %v1450_v41, %v625_v40  ;;  %v654_v41 = vld [vmem:[%s3778_s0 + $0x1428] sm:$0xff] }
 0x4d2   :  { %v1452_v46 = vadd.f32 %v1451_v44, %v626_v42  ;;  %v656_v42 = vld [vmem:[%s3778_s0 + $0x1438] sm:$0xff]  ;;  %v655_v44 = vld [vmem:[%s3778_s0 + $0x1430] sm:$0xff] }
 0x4d4   :  { %v1453_v48 = vadd.f32 %v1452_v46, %v627_v45  ;;  %v1489_v46 = vsel %vm683_vm0, %v656_v42, 0.0 }
 0x4d6   :  { %v1455_v50 = vadd.f32 %v1454_v47, %v1453_v48  ;;  %v657_v48 = vld [vmem:[%s3778_s0 + $0x1440] sm:$0xff] }
 0x4d8   :  { %v1456_v53 = vadd.f32 %v1455_v50, %v629_v49  ;;  %v658_v50 = vld [vmem:[%s3778_s0 + $0x1448] sm:$0xff] }
 0x4da   :  { %v1457_v55 = vadd.f32 %v1456_v53, %v630_v51  ;;  %v660_v51 = vld [vmem:[%s3778_s0 + $0x1458] sm:$0xff]  ;;  %v659_v53 = vld [vmem:[%s3778_s0 + $0x1450] sm:$0xff] }
 0x4dc   :  { %v1458_v57 = vadd.f32 %v1457_v55, %v631_v54  ;;  %v1494_v55 = vsel %vm683_vm0, %v660_v51, 0.0 }
 0x4de   :  { %v1460_v59 = vadd.f32 %v1459_v56, %v1458_v57  ;;  %v661_v57 = vld [vmem:[%s3778_s0 + $0x1460] sm:$0xff] }
 0x4e0   :  { %v1461_v62 = vadd.f32 %v1460_v59, %v633_v58  ;;  %v662_v59 = vld [vmem:[%s3778_s0 + $0x1468] sm:$0xff] }
 0x4e2   :  { %v1462_v0 = vadd.f32 %v1461_v62, %v634_v60  ;;  %v664_v60 = vld [vmem:[%s3778_s0 + $0x1478] sm:$0xff]  ;;  %v663_v62 = vld [vmem:[%s3778_s0 + $0x1470] sm:$0xff] }
 0x4e4   :  { %v1463_v2 = vadd.f32 %v1462_v0, %v635_v63  ;;  %v1499_v0 = vsel %vm683_vm0, %v664_v60, 0.0 }
 0x4e6   :  { %v1465_v4 = vadd.f32 %v1464_v1, %v1463_v2  ;;  %v665_v2 = vld [vmem:[%s3778_s0 + $0x1480] sm:$0xff] }
 0x4e8   :  { %v1466_v7 = vadd.f32 %v1465_v4, %v637_v3  ;;  %v666_v4 = vld [vmem:[%s3778_s0 + $0x1488] sm:$0xff] }
 0x4ea   :  { %v1467_v9 = vadd.f32 %v1466_v7, %v638_v5  ;;  %v668_v5 = vld [vmem:[%s3778_s0 + $0x1498] sm:$0xff]  ;;  %v667_v7 = vld [vmem:[%s3778_s0 + $0x1490] sm:$0xff] }
 0x4ec   :  { %v1468_v11 = vadd.f32 %v1467_v9, %v639_v8  ;;  %v1504_v9 = vsel %vm683_vm0, %v668_v5, 0.0 }
 0x4ee   :  { %v1470_v13 = vadd.f32 %v1469_v10, %v1468_v11  ;;  %v669_v11 = vld [vmem:[%s3778_s0 + $0x14a0] sm:$0xff] }
 0x4f0   :  { %v1471_v16 = vadd.f32 %v1470_v13, %v641_v12  ;;  %v670_v13 = vld [vmem:[%s3778_s0 + $0x14a8] sm:$0xff] }
 0x4f2   :  { %v1472_v18 = vadd.f32 %v1471_v16, %v642_v14  ;;  %v672_v14 = vld [vmem:[%s3778_s0 + $0x14b8] sm:$0xff]  ;;  %v671_v16 = vld [vmem:[%s3778_s0 + $0x14b0] sm:$0xff] }
 0x4f4   :  { %v1473_v20 = vadd.f32 %v1472_v18, %v643_v17  ;;  %v1509_v18 = vsel %vm683_vm0, %v672_v14, 0.0 }
 0x4f6   :  { %v1475_v22 = vadd.f32 %v1474_v19, %v1473_v20  ;;  %v673_v20 = vld [vmem:[%s3778_s0 + $0x14c0] sm:$0xff] }
 0x4f8   :  { %v1476_v25 = vadd.f32 %v1475_v22, %v645_v21  ;;  %v674_v22 = vld [vmem:[%s3778_s0 + $0x14c8] sm:$0xff] }
 0x4fa   :  { %v1477_v27 = vadd.f32 %v1476_v25, %v646_v23  ;;  %v676_v23 = vld [vmem:[%s3778_s0 + $0x14d8] sm:$0xff]  ;;  %v675_v25 = vld [vmem:[%s3778_s0 + $0x14d0] sm:$0xff] }
 0x4fc   :  { %v1478_v29 = vadd.f32 %v1477_v27, %v647_v26  ;;  %v1514_v27 = vsel %vm683_vm0, %v676_v23, 0.0 }
 0x4fe   :  { %v1480_v31 = vadd.f32 %v1479_v28, %v1478_v29  ;;  %v677_v29 = vld [vmem:[%s3778_s0 + $0x14e0] sm:$0xff] }
 0x500   :  { %v1481_v34 = vadd.f32 %v1480_v31, %v649_v30  ;;  %v678_v31 = vld [vmem:[%s3778_s0 + $0x14e8] sm:$0xff] }
 0x502   :  { %v1482_v36 = vadd.f32 %v1481_v34, %v650_v32  ;;  %v680_v32 = vld [vmem:[%s3778_s0 + $0x14f8] sm:$0xff]  ;;  %v679_v34 = vld [vmem:[%s3778_s0 + $0x14f0] sm:$0xff]  ;;  %s1542_s0 = sshll.u32 %s3779_s1, 4  ;;  %s1543_s0 = int_to_ptr.hbm [resolvable:$true] %s1542_s0 }
 0x504   :  { %v1483_v38 = vadd.f32 %v1482_v36, %v651_v35  ;;  %v1519_v36 = vsel %vm683_vm0, %v680_v32, 0.0 }
 0x506   :  { %v1485_v40 = vadd.f32 %v1484_v37, %v1483_v38 }
 0x508   :  { %v1486_v43 = vadd.f32 %v1485_v40, %v653_v39 }
 0x50a   :  { %v1487_v45 = vadd.f32 %v1486_v43, %v654_v41 }
 0x50c   :  { %v1488_v47 = vadd.f32 %v1487_v45, %v655_v44 }
 0x50e   :  { %v1490_v49 = vadd.f32 %v1489_v46, %v1488_v47 }
 0x510   :  { %v1491_v52 = vadd.f32 %v1490_v49, %v657_v48 }
 0x512   :  { %v1492_v54 = vadd.f32 %v1491_v52, %v658_v50 }
 0x514   :  { %v1493_v56 = vadd.f32 %v1492_v54, %v659_v53 }
 0x516   :  { %v1495_v58 = vadd.f32 %v1494_v55, %v1493_v56 }
 0x518   :  { %v1496_v61 = vadd.f32 %v1495_v58, %v661_v57 }
 0x51a   :  { %v1497_v63 = vadd.f32 %v1496_v61, %v662_v59 }
 0x51c   :  { %v1498_v1 = vadd.f32 %v1497_v63, %v663_v62 }
 0x51e   :  { %v1500_v3 = vadd.f32 %v1499_v0, %v1498_v1 }
 0x520   :  { %v1501_v6 = vadd.f32 %v1500_v3, %v665_v2 }
 0x522   :  { %v1502_v8 = vadd.f32 %v1501_v6, %v666_v4 }
 0x524   :  { %v1503_v10 = vadd.f32 %v1502_v8, %v667_v7 }
 0x526   :  { %v1505_v12 = vadd.f32 %v1504_v9, %v1503_v10 }
 0x528   :  { %v1506_v15 = vadd.f32 %v1505_v12, %v669_v11 }
 0x52a   :  { %v1507_v17 = vadd.f32 %v1506_v15, %v670_v13 }
 0x52c   :  { %v1508_v19 = vadd.f32 %v1507_v17, %v671_v16 }
 0x52e   :  { %v1510_v21 = vadd.f32 %v1509_v18, %v1508_v19 }
 0x530   :  { %v1511_v24 = vadd.f32 %v1510_v21, %v673_v20 }
 0x532   :  { %v1512_v26 = vadd.f32 %v1511_v24, %v674_v22 }
 0x534   :  { %v1513_v28 = vadd.f32 %v1512_v26, %v675_v25 }
 0x536   :  { %v1515_v30 = vadd.f32 %v1514_v27, %v1513_v28 }
 0x538   :  { %v1516_v33 = vadd.f32 %v1515_v30, %v677_v29 }
 0x53a   :  { %v1517_v35 = vadd.f32 %v1516_v33, %v678_v31 }
 0x53c   :  { %v1518_v37 = vadd.f32 %v1517_v35, %v679_v34 }
 0x53e   :  { %v1520_v38 = vadd.f32 %v1519_v36, %v1518_v37 }
 0x540   :  { %1521 = vadd.xlane.f32.xlu0 %v1520_v38 }
 0x5b3   :  { %v1522_v39 = vpop.xlane.xlu0 %1521 }
 0x5b4   :  { %v1523_v40 = vrot.slane %v1522_v39, 4 }
 0x5b6   :  { %v1524_v41 = vadd.f32 %v1523_v40, %v1522_v39 }
 0x5b8   :  { %v1525_v42 = vrot.slane %v1524_v41, 2 }
 0x5ba   :  { %v1526_v43 = vadd.f32 %v1525_v42, %v1524_v41 }
 0x5bc   :  { %v1527_v44 = vrot.slane %v1526_v43, 1 }
 0x5be   :  { %v1528_v45 = vadd.f32 %v1527_v44, %v1526_v43 }
 0x5c0   :  { %1551 = vpush %v1528_v45 }
 0x5f1   :  { %s1552_s20 = spop %1551 }
 0x5f2   :  { %s1530_s21 = smul.f32 1.6608205e-06, %s1552_s20 }
 0x5f4   :  { %v1531_v46 = vstv %s1530_s21 }
 0x5f5   :  { %1534 = vst.msk [vmem:[#allocation2] sm:$0x1] %vm1533_vm1, %v1531_v46 }
 0x5f6   :  { %1545 = dma.vmem_to_hbm [thread:$0]  %s1541_s17, 16, %s1543_s0, [#allocation3]  }
 0x5f7   :  { %1578 = dma.done.wait [#allocation3], 16  }
 0x5f8   :  { %1579 = vsyncadd [#allocation3], 4294967280 }
 0x5f9   :  { %1550 = vsyncpa [#allocation3], 1 }

</bundles_post_ra>
